<compile_context>
chip_gen: v6e
topology: v6e:2x2x1
jax: 0.10.0
libtpu: 0.0.40
codegen_flags: <defaults>
</compile_context>

<pallas_src>
import functools

import numpy as np
import jax
import jax.numpy as jnp
from jax import lax
from jax.experimental import pallas as pl
from jax.experimental.pallas import tpu as pltpu


# Geometry implied by fc1 (32 * 8 * 2 features after two 2x2 pools).
H, W = 32, 8          # conv1 spatial
H1, W1 = 16, 4        # after pool1
H2, W2 = 8, 2         # after pool2
C1, C2 = 16, 32       # conv channel counts


# ----------------------------------------------------------------- kernel ---

def _fused_cnn_kernel(lhs1_ref, w1_ref, b1_ref, w2_ref, b2_ref, wf_ref, bf_ref,
                      o_ref, c1_ref, p1pad_ref, c2_ref, p2_ref, *, tb, cdt):
    f32 = jnp.float32
    R, R1, R2 = tb * H, tb * H1, tb * H2

    # ---- conv1 + bias + relu: single MXU dot, kh folded into K=24. ----------
    acc1 = jnp.dot(lhs1_ref[...], w1_ref[...], preferred_element_type=f32)
    acc1 = jnp.maximum(acc1 + b1_ref[...], 0.0)        # (R,128) lanes=(dw,w1,c1)
    # W-direction half of pool1 fused while acc1 is in vregs (lane-half max).
    c1_ref[...] = jnp.maximum(acc1[:, 0:64], acc1[:, 64:128])          # (R, 64)

    # ---- pool1, H direction: stride-2 row reads of the VMEM-resident slab. --
    pooled1 = jnp.maximum(c1_ref[pl.ds(0, R1, stride=2), :],
                          c1_ref[pl.ds(1, R1, stride=2), :])           # (R1, 64)

    # ---- conv2 LHS: +-1 row shifts via a globally padded scratch; per-image
    #      H boundaries handled with iota masks (no per-image loops).
    p1pad_ref[0:1, :] = jnp.zeros((1, W1 * C1), f32)
    p1pad_ref[R1 + 1:R1 + 2, :] = jnp.zeros((1, W1 * C1), f32)
    p1pad_ref[1:R1 + 1, :] = pooled1
    h1 = lax.broadcasted_iota(jnp.int32, (R1, W1 * C1), 0) & (H1 - 1)
    up1 = jnp.where(h1 == 0, 0.0, p1pad_ref[0:R1, :])                  # row h1-1
    dn1 = jnp.where(h1 == H1 - 1, 0.0, p1pad_ref[2:R1 + 2, :])         # row h1+1
    lhs2 = jnp.concatenate([up1, pooled1, dn1], axis=-1).astype(cdt)   # (R1,192)

    # ---- conv2 + bias + relu: single dot (K=192) + fused W-pool. ------------
    acc2 = jnp.dot(lhs2, w2_ref[...], preferred_element_type=f32)
    acc2 = jnp.maximum(acc2 + b2_ref[...], 0.0)        # (R1,128) lanes=(dw,w2,c2)
    c2_ref[...] = jnp.maximum(acc2[:, 0:64], acc2[:, 64:128])          # (R1, 64)

    # ---- pool2, H direction. -------------------------------------------------
    p2_ref[...] = jnp.maximum(c2_ref[pl.ds(0, R2, stride=2), :],
                              c2_ref[pl.ds(1, R2, stride=2), :])       # (R2, 64)

    # ---- fc1: lane-dense (h2, w2, c2) flatten -> one (tb,512)@(512,8) dot. ---
    fc_in = jnp.concatenate(
        [p2_ref[pl.ds(h2, tb, stride=H2), :] for h2 in range(H2)], axis=-1)
    o_ref[...] = jnp.dot(fc_in.astype(cdt), wf_ref[...],
                         preferred_element_type=f32) + bf_ref[...]


# --------------------------------------------------------------- wrappers ---

def simple_cnn_forward(x_nchw, prepared, *, block_batch=8):
    """NCHW input (N, 1, 32, 8) -> (N, 8), single fused Pallas kernel."""
    w1f, b1r, w2f, b2r, wf, bf = prepared
    cdt = w1f.dtype
    N = x_nchw.shape[0]
    assert x_nchw.shape[1:] == (1, H, W)

    # Batch tile: multiple of 8 (output block sublane rule) unless N is tiny.
    if N >= block_batch:
        tb = block_batch
        n_pad = (-N) % tb
    else:
        tb, n_pad = N, 0
    n_total = N + n_pad
    grid = (n_total // tb,)

    # Only per-forward XLA glue: the tiny conv1 im2col (kh folded into lanes),
    # built once on the ~2 KB/image raw input and cast to the MXU dtype.
    x = x_nchw.reshape(N, H, W).astype(jnp.float32)
    if n_pad:
        x = jnp.concatenate([x, jnp.zeros((n_pad, H, W), jnp.float32)], axis=0)
    xpad = jnp.pad(x, ((0, 0), (1, 1), (0, 0)))                  # (Np, 34, 8)
    lhs1 = jnp.concatenate(
        [xpad[:, 0:H, :], xpad[:, 1:H + 1, :], xpad[:, 2:H + 2, :]],
        axis=-1).reshape(n_total * H, 3 * W).astype(cdt)          # (Np*32, 24)

    flops = 2 * n_total * (H * (3 * W) * 128
                           + H1 * (3 * W1 * C1) * 128
                           + (H2 * W2 * C2) * 8)
    bytes_accessed = (lhs1.size * lhs1.dtype.itemsize
                      + sum(int(a.size) * a.dtype.itemsize for a in prepared)
                      + n_total * 8 * 4)

    kernel = functools.partial(_fused_cnn_kernel, tb=tb, cdt=cdt)
    out = pl.pallas_call(
        kernel,
        out_shape=jax.ShapeDtypeStruct((n_total, 8), jnp.float32),
        grid=grid,
        in_specs=[
            pl.BlockSpec((tb * H, 3 * W), lambda i: (i, 0)),       # conv1 im2col
            pl.BlockSpec((3 * W, 128), lambda i: (0, 0)),          # w1 (24,128)
            pl.BlockSpec((1, 128), lambda i: (0, 0)),              # b1
            pl.BlockSpec((3 * W1 * C1, 128), lambda i: (0, 0)),    # w2 (192,128)
            pl.BlockSpec((1, 128), lambda i: (0, 0)),              # b2
            pl.BlockSpec((H2 * W2 * C2, 8), lambda i: (0, 0)),     # wf (512,8)
            pl.BlockSpec((1, 8), lambda i: (0, 0)),                # bf
        ],
        out_specs=pl.BlockSpec((tb, 8), lambda i: (i, 0)),
        scratch_shapes=[
            pltpu.VMEM((tb * H, W1 * C1), jnp.float32),       # conv1 relu+W-pool
            pltpu.VMEM((tb * H1 + 2, W1 * C1), jnp.float32),  # pooled1, H-padded
            pltpu.VMEM((tb * H1, W2 * C2), jnp.float32),      # conv2 relu+W-pool
            pltpu.VMEM((tb * H2, W2 * C2), jnp.float32),      # pooled2
        ],
        compiler_params=pltpu.CompilerParams(
            dimension_semantics=("parallel",)),
        cost_estimate=pl.CostEstimate(flops=int(flops), transcendentals=0,
                                      bytes_accessed=int(bytes_accessed)),
    )(lhs1, w1f, b1r, w2f, b2r, wf, bf)
    return out[:N]


# --------------------------------------------------- params / weight prep ---

def init_params(key):
    k1, k2, k3, k4, k5, k6 = jax.random.split(key, 6)
    w1 = jax.random.normal(k1, (16, 1, 3, 3), jnp.float32) * 0.10
    b1 = jax.random.normal(k2, (16,), jnp.float32) * 0.10
    w2 = jax.random.normal(k3, (32, 16, 3, 3), jnp.float32) * 0.05
    b2 = jax.random.normal(k4, (32,), jnp.float32) * 0.05
    wfc = jax.random.normal(k5, (8, 512), jnp.float32) * 0.05
    bfc = jax.random.normal(k6, (8,), jnp.float32) * 0.05
    return (w1, b1, w2, b2, wfc, bfc)


def prepare_params(params, compute_dtype=jnp.bfloat16):
    """One-time weight reorders: W-banded + kh-folded conv weights, tiled biases,
    fc weight permuted to the kernel's (h2, w2, c2) flatten order; MXU operands
    cast to `compute_dtype` (bf16 -> full-rate MXU on v6e/v7x)."""
    w1, b1, w2, b2, wfc, bfc = params
    w1_np = np.asarray(w1)   # (16, 1, 3, 3)
    w2_np = np.asarray(w2)   # (32, 16, 3, 3)

    # conv1 folded weight: rows = kh*8 + w_src, cols = (dw, w1_out, c1) -> (24, 128)
    w1r = np.zeros((3, W, 128), np.float32)
    for kh in range(3):
        for wsrc in range(W):
            for dw in range(2):
                for w1i in range(W1):
                    kw = wsrc - (2 * w1i + dw) + 1
                    if 0 <= kw <= 2:
                        col = (dw * W1 + w1i) * C1
                        w1r[kh, wsrc, col:col + C1] = w1_np[:, 0, kh, kw]
    w1f = w1r.reshape(3 * W, 128)
    b1r = np.tile(np.asarray(b1), 2 * W1).reshape(1, 128)

    # conv2 folded weight: rows = kh*64 + w1_src*16 + c1, cols = (dw, w2_out, c2)
    w2r = np.zeros((3, W1 * C1, 128), np.float32)
    for kh in range(3):
        for w1src in range(W1):
            for ci in range(C1):
                for dw in range(2):
                    for w2i in range(W2):
                        kw = w1src - (2 * w2i + dw) + 1
                        if 0 <= kw <= 2:
                            col = (dw * W2 + w2i) * C2
                            w2r[kh, w1src * C1 + ci, col:col + C2] = \
                                w2_np[:, ci, kh, kw]
    w2f = w2r.reshape(3 * W1 * C1, 128)
    b2r = np.tile(np.asarray(b2), 2 * W2).reshape(1, 128)

    # fc weight permuted from PyTorch's (c2, h2, w2) flatten to (h2, w2, c2).
    wf = np.transpose(np.asarray(wfc).reshape(8, C2, H2, W2),
                      (2, 3, 1, 0)).reshape(H2 * W2 * C2, 8)
    bf = np.asarray(bfc).reshape(1, 8)

    return (jnp.asarray(w1f, compute_dtype), jnp.asarray(b1r, jnp.float32),
            jnp.asarray(w2f, compute_dtype), jnp.asarray(b2r, jnp.float32),
            jnp.asarray(wf, compute_dtype), jnp.asarray(bf, jnp.float32))


# ---------------------------------------------------------------- reference -

def reference_forward(x, params):
    """Pure-JAX f32 reference mirroring the PyTorch forward exactly."""
    w1, b1, w2, b2, wfc, bfc = params

    def conv(y, w, b):
        y = lax.conv_general_dilated(y, w, (1, 1), ((1, 1), (1, 1)),
                                     dimension_numbers=('NCHW', 'OIHW', 'NCHW'))
        return jnp.maximum(y + b[None, :, None, None], 0.0)

    def pool(y):
        return lax.reduce_window(y, -jnp.inf, lax.max,
                                 (1, 1, 2, 2), (1, 1, 2, 2), 'VALID')

    y = pool(conv(x, w1, b1))
    y = pool(conv(y, w2, b2))
    y = y.reshape(y.shape[0], -1)
    return y @ wfc.T + bfc


if __name__ == "__main__":
    key = jax.random.PRNGKey(0)
    pkey, xkey = jax.random.split(key)
    params = init_params(pkey)
    prepared = prepare_params(params)      # one-time weight reorders (+ bf16 cast)

    # N=16 with TB=8 -> grid of 2 "parallel" steps (exercises megacore split).
    x = jax.random.normal(xkey, (16, 1, 32, 8), jnp.float32)

    fwd = jax.jit(simple_cnn_forward)
    out = jax.block_until_ready(fwd(x, prepared))

    ref = reference_forward(x, params)
    assert out.shape == (16, 8), out.shape
    # Tolerance loosened for bf16 MXU operands (f32 accumulation); the f32
    # reference differs by O(1e-2) on O(0.3)-magnitude outputs.
    err = float(jnp.max(jnp.abs(out - ref)))
    assert jnp.allclose(out, ref, rtol=5e-2, atol=5e-2), \
        f"mismatch vs reference (max abs err {err})"
    print("KERNEL_OK")
</pallas_src>

<mosaic_0001>
module attributes {stable_mosaic.version = 11 : i64} {
  func.func @_fused_cnn_kernel(%arg0: i32, %arg1: memref<256x24xbf16, #tpu.memory_space<vmem>>, %arg2: memref<24x128xbf16, #tpu.memory_space<vmem>>, %arg3: memref<1x128xf32, #tpu.memory_space<vmem>>, %arg4: memref<192x128xbf16, #tpu.memory_space<vmem>>, %arg5: memref<1x128xf32, #tpu.memory_space<vmem>>, %arg6: memref<512x8xbf16, #tpu.memory_space<vmem>>, %arg7: memref<1x8xf32, #tpu.memory_space<vmem>>, %arg8: memref<8x8xf32, #tpu.memory_space<vmem>>, %arg9: memref<256x64xf32, #tpu.memory_space<vmem>>, %arg10: memref<130x64xf32, #tpu.memory_space<vmem>>, %arg11: memref<128x64xf32, #tpu.memory_space<vmem>>, %arg12: memref<64x64xf32, #tpu.memory_space<vmem>>) attributes {dimension_semantics = [#tpu.dimension_semantics<parallel>], iteration_bounds = array<i64: 2>, scalar_prefetch = 0 : i64, scratch_operands = 4 : i64, tpu.core_type = #tpu.core_type<tc>, window_params = [{transform_indices = @transform_0, window_bounds = array<i64: 256, 24>}, {pipeline_mode = #tpu.pipeline_mode<synchronous>, transform_indices = @transform_1, window_bounds = array<i64: 24, 128>}, {pipeline_mode = #tpu.pipeline_mode<synchronous>, transform_indices = @transform_2, window_bounds = array<i64: 1, 128>}, {pipeline_mode = #tpu.pipeline_mode<synchronous>, transform_indices = @transform_3, window_bounds = array<i64: 192, 128>}, {pipeline_mode = #tpu.pipeline_mode<synchronous>, transform_indices = @transform_4, window_bounds = array<i64: 1, 128>}, {pipeline_mode = #tpu.pipeline_mode<synchronous>, transform_indices = @transform_5, window_bounds = array<i64: 512, 8>}, {pipeline_mode = #tpu.pipeline_mode<synchronous>, transform_indices = @transform_6, window_bounds = array<i64: 1, 8>}, {transform_indices = @transform_7, window_bounds = array<i64: 8, 8>}]} {
    %c0 = arith.constant 0 : index
    %c0_0 = arith.constant 0 : index
    %0 = vector.load %arg1[%c0, %c0_0] : memref<256x24xbf16, #tpu.memory_space<vmem>>, vector<256x24xbf16>
    %c0_1 = arith.constant 0 : index
    %c0_2 = arith.constant 0 : index
    %1 = vector.load %arg2[%c0_1, %c0_2] : memref<24x128xbf16, #tpu.memory_space<vmem>>, vector<24x128xbf16>
    %cst = arith.constant dense<0.000000e+00> : vector<256x128xf32>
    %2 = tpu.matmul %0, %1, %cst {dimension_numbers = #tpu.dot_dimension_numbers<[1], [0], [0], [1], [0, 0, 1, 1], [], []>} : vector<256x24xbf16>, vector<24x128xbf16>, vector<256x128xf32> -> vector<256x128xf32>
    %c0_3 = arith.constant 0 : index
    %c0_4 = arith.constant 0 : index
    %3 = vector.load %arg3[%c0_3, %c0_4] : memref<1x128xf32, #tpu.memory_space<vmem>>, vector<1x128xf32>
    %4 = vector.broadcast %3 : vector<1x128xf32> to vector<256x128xf32>
    %5 = arith.addf %2, %4 : vector<256x128xf32>
    %cst_5 = arith.constant 0.000000e+00 : f32
    %6 = vector.broadcast %cst_5 : f32 to vector<256x128xf32>
    %7 = arith.maximumf %5, %6 : vector<256x128xf32>
    %8 = vector.extract_strided_slice %7 {offsets = [0, 0], sizes = [256, 64], strides = [1, 1]} : vector<256x128xf32> to vector<256x64xf32>
    %9 = vector.extract_strided_slice %7 {offsets = [0, 64], sizes = [256, 64], strides = [1, 1]} : vector<256x128xf32> to vector<256x64xf32>
    %10 = arith.maximumf %8, %9 : vector<256x64xf32>
    %c0_6 = arith.constant 0 : index
    %c0_7 = arith.constant 0 : index
    %11 = vector.load %arg9[%c0_6, %c0_7] : memref<256x64xf32, #tpu.memory_space<vmem>>, vector<256x64xf32>
    tpu.vector_store %arg9[%c0_6, %c0_7], %10 {strides = array<i32>} : memref<256x64xf32, #tpu.memory_space<vmem>>, vector<256x64xf32>,
    %c0_8 = arith.constant 0 : index
    %c0_9 = arith.constant 0 : index
    %12 = tpu.strided_load %arg9[%c0_8, %c0_9] {strides = array<i32: 2, 1>} : memref<256x64xf32, #tpu.memory_space<vmem>>, vector<128x64xf32>
    %c1 = arith.constant 1 : index
    %c0_10 = arith.constant 0 : index
    %13 = tpu.strided_load %arg9[%c1, %c0_10] {strides = array<i32: 2, 1>} : memref<256x64xf32, #tpu.memory_space<vmem>>, vector<128x64xf32>
    %14 = arith.maximumf %12, %13 : vector<128x64xf32>
    %cst_11 = arith.constant 0.000000e+00 : f32
    %15 = vector.broadcast %cst_11 : f32 to vector<1x64xf32>
    %c0_12 = arith.constant 0 : index
    %c0_13 = arith.constant 0 : index
    %16 = vector.load %arg10[%c0_12, %c0_13] : memref<130x64xf32, #tpu.memory_space<vmem>>, vector<1x64xf32>
    tpu.vector_store %arg10[%c0_12, %c0_13], %15 {strides = array<i32>} : memref<130x64xf32, #tpu.memory_space<vmem>>, vector<1x64xf32>,
    %cst_14 = arith.constant 0.000000e+00 : f32
    %17 = vector.broadcast %cst_14 : f32 to vector<1x64xf32>
    %c129 = arith.constant 129 : index
    %c0_15 = arith.constant 0 : index
    %18 = vector.load %arg10[%c129, %c0_15] : memref<130x64xf32, #tpu.memory_space<vmem>>, vector<1x64xf32>
    tpu.vector_store %arg10[%c129, %c0_15], %17 {strides = array<i32>} : memref<130x64xf32, #tpu.memory_space<vmem>>, vector<1x64xf32>,
    %c1_16 = arith.constant 1 : index
    %c0_17 = arith.constant 0 : index
    %19 = vector.load %arg10[%c1_16, %c0_17] : memref<130x64xf32, #tpu.memory_space<vmem>>, vector<128x64xf32>
    tpu.vector_store %arg10[%c1_16, %c0_17], %14 {strides = array<i32>} : memref<130x64xf32, #tpu.memory_space<vmem>>, vector<128x64xf32>,
    %20 = tpu.iota {dimensions = array<i32: 0>} : vector<128x64xi32>
    %c15_i32 = arith.constant 15 : i32
    %21 = vector.broadcast %c15_i32 : i32 to vector<128x64xi32>
    %22 = arith.andi %20, %21 : vector<128x64xi32>
    %c0_i32 = arith.constant 0 : i32
    %23 = vector.broadcast %c0_i32 : i32 to vector<128x64xi32>
    %24 = arith.cmpi eq, %22, %23 : vector<128x64xi32>
    %c0_18 = arith.constant 0 : index
    %c0_19 = arith.constant 0 : index
    %25 = vector.load %arg10[%c0_18, %c0_19] : memref<130x64xf32, #tpu.memory_space<vmem>>, vector<128x64xf32>
    %cst_20 = arith.constant 0.000000e+00 : f32
    %26 = vector.broadcast %cst_20 : f32 to vector<128x64xf32>
    %27 = arith.select %24, %26, %25 : vector<128x64xi1>, vector<128x64xf32>
    %c15_i32_21 = arith.constant 15 : i32
    %28 = vector.broadcast %c15_i32_21 : i32 to vector<128x64xi32>
    %29 = arith.cmpi eq, %22, %28 : vector<128x64xi32>
    %c2 = arith.constant 2 : index
    %c0_22 = arith.constant 0 : index
    %30 = vector.load %arg10[%c2, %c0_22] : memref<130x64xf32, #tpu.memory_space<vmem>>, vector<128x64xf32>
    %cst_23 = arith.constant 0.000000e+00 : f32
    %31 = vector.broadcast %cst_23 : f32 to vector<128x64xf32>
    %32 = arith.select %29, %31, %30 : vector<128x64xi1>, vector<128x64xf32>
    %33 = tpu.concatenate %27, %14, %32 in 1 : vector<128x64xf32>, vector<128x64xf32>, vector<128x64xf32> -> vector<128x192xf32>
    %34 = arith.truncf %33 : vector<128x192xf32> to vector<128x192xbf16>
    %c0_24 = arith.constant 0 : index
    %c0_25 = arith.constant 0 : index
    %35 = vector.load %arg4[%c0_24, %c0_25] : memref<192x128xbf16, #tpu.memory_space<vmem>>, vector<192x128xbf16>
    %cst_26 = arith.constant dense<0.000000e+00> : vector<128x128xf32>
    %36 = tpu.matmul %34, %35, %cst_26 {dimension_numbers = #tpu.dot_dimension_numbers<[1], [0], [0], [1], [0, 0, 1, 1], [], []>} : vector<128x192xbf16>, vector<192x128xbf16>, vector<128x128xf32> -> vector<128x128xf32>
    %c0_27 = arith.constant 0 : index
    %c0_28 = arith.constant 0 : index
    %37 = vector.load %arg5[%c0_27, %c0_28] : memref<1x128xf32, #tpu.memory_space<vmem>>, vector<1x128xf32>
    %38 = vector.broadcast %37 : vector<1x128xf32> to vector<128x128xf32>
    %39 = arith.addf %36, %38 : vector<128x128xf32>
    %cst_29 = arith.constant 0.000000e+00 : f32
    %40 = vector.broadcast %cst_29 : f32 to vector<128x128xf32>
    %41 = arith.maximumf %39, %40 : vector<128x128xf32>
    %42 = vector.extract_strided_slice %41 {offsets = [0, 0], sizes = [128, 64], strides = [1, 1]} : vector<128x128xf32> to vector<128x64xf32>
    %43 = vector.extract_strided_slice %41 {offsets = [0, 64], sizes = [128, 64], strides = [1, 1]} : vector<128x128xf32> to vector<128x64xf32>
    %44 = arith.maximumf %42, %43 : vector<128x64xf32>
    %c0_30 = arith.constant 0 : index
    %c0_31 = arith.constant 0 : index
    %45 = vector.load %arg11[%c0_30, %c0_31] : memref<128x64xf32, #tpu.memory_space<vmem>>, vector<128x64xf32>
    tpu.vector_store %arg11[%c0_30, %c0_31], %44 {strides = array<i32>} : memref<128x64xf32, #tpu.memory_space<vmem>>, vector<128x64xf32>,
    %c0_32 = arith.constant 0 : index
    %c0_33 = arith.constant 0 : index
    %46 = tpu.strided_load %arg11[%c0_32, %c0_33] {strides = array<i32: 2, 1>} : memref<128x64xf32, #tpu.memory_space<vmem>>, vector<64x64xf32>
    %c1_34 = arith.constant 1 : index
    %c0_35 = arith.constant 0 : index
    %47 = tpu.strided_load %arg11[%c1_34, %c0_35] {strides = array<i32: 2, 1>} : memref<128x64xf32, #tpu.memory_space<vmem>>, vector<64x64xf32>
    %48 = arith.maximumf %46, %47 : vector<64x64xf32>
    %c0_36 = arith.constant 0 : index
    %c0_37 = arith.constant 0 : index
    %49 = vector.load %arg12[%c0_36, %c0_37] : memref<64x64xf32, #tpu.memory_space<vmem>>, vector<64x64xf32>
    tpu.vector_store %arg12[%c0_36, %c0_37], %48 {strides = array<i32>} : memref<64x64xf32, #tpu.memory_space<vmem>>, vector<64x64xf32>,
    %c0_38 = arith.constant 0 : index
    %c0_39 = arith.constant 0 : index
    %50 = tpu.strided_load %arg12[%c0_38, %c0_39] {strides = array<i32: 8, 1>} : memref<64x64xf32, #tpu.memory_space<vmem>>, vector<8x64xf32>
    %c1_40 = arith.constant 1 : index
    %c0_41 = arith.constant 0 : index
    %51 = tpu.strided_load %arg12[%c1_40, %c0_41] {strides = array<i32: 8, 1>} : memref<64x64xf32, #tpu.memory_space<vmem>>, vector<8x64xf32>
    %c2_42 = arith.constant 2 : index
    %c0_43 = arith.constant 0 : index
    %52 = tpu.strided_load %arg12[%c2_42, %c0_43] {strides = array<i32: 8, 1>} : memref<64x64xf32, #tpu.memory_space<vmem>>, vector<8x64xf32>
    %c3 = arith.constant 3 : index
    %c0_44 = arith.constant 0 : index
    %53 = tpu.strided_load %arg12[%c3, %c0_44] {strides = array<i32: 8, 1>} : memref<64x64xf32, #tpu.memory_space<vmem>>, vector<8x64xf32>
    %c4 = arith.constant 4 : index
    %c0_45 = arith.constant 0 : index
    %54 = tpu.strided_load %arg12[%c4, %c0_45] {strides = array<i32: 8, 1>} : memref<64x64xf32, #tpu.memory_space<vmem>>, vector<8x64xf32>
    %c5 = arith.constant 5 : index
    %c0_46 = arith.constant 0 : index
    %55 = tpu.strided_load %arg12[%c5, %c0_46] {strides = array<i32: 8, 1>} : memref<64x64xf32, #tpu.memory_space<vmem>>, vector<8x64xf32>
    %c6 = arith.constant 6 : index
    %c0_47 = arith.constant 0 : index
    %56 = tpu.strided_load %arg12[%c6, %c0_47] {strides = array<i32: 8, 1>} : memref<64x64xf32, #tpu.memory_space<vmem>>, vector<8x64xf32>
    %c7 = arith.constant 7 : index
    %c0_48 = arith.constant 0 : index
    %57 = tpu.strided_load %arg12[%c7, %c0_48] {strides = array<i32: 8, 1>} : memref<64x64xf32, #tpu.memory_space<vmem>>, vector<8x64xf32>
    %58 = tpu.concatenate %50, %51, %52, %53, %54, %55, %56, %57 in 1 : vector<8x64xf32>, vector<8x64xf32>, vector<8x64xf32>, vector<8x64xf32>, vector<8x64xf32>, vector<8x64xf32>, vector<8x64xf32>, vector<8x64xf32> -> vector<8x512xf32>
    %59 = arith.truncf %58 : vector<8x512xf32> to vector<8x512xbf16>
    %c0_49 = arith.constant 0 : index
    %c0_50 = arith.constant 0 : index
    %60 = vector.load %arg6[%c0_49, %c0_50] : memref<512x8xbf16, #tpu.memory_space<vmem>>, vector<512x8xbf16>
    %cst_51 = arith.constant dense<0.000000e+00> : vector<8x8xf32>
    %61 = tpu.matmul %59, %60, %cst_51 {dimension_numbers = #tpu.dot_dimension_numbers<[1], [0], [0], [1], [0, 0, 1, 1], [], []>} : vector<8x512xbf16>, vector<512x8xbf16>, vector<8x8xf32> -> vector<8x8xf32>
    %c0_52 = arith.constant 0 : index
    %c0_53 = arith.constant 0 : index
    %62 = vector.load %arg7[%c0_52, %c0_53] : memref<1x8xf32, #tpu.memory_space<vmem>>, vector<1x8xf32>
    %63 = vector.broadcast %62 : vector<1x8xf32> to vector<8x8xf32>
    %64 = arith.addf %61, %63 : vector<8x8xf32>
    %c0_54 = arith.constant 0 : index
    %c0_55 = arith.constant 0 : index
    %65 = vector.load %arg8[%c0_54, %c0_55] : memref<8x8xf32, #tpu.memory_space<vmem>>, vector<8x8xf32>
    tpu.vector_store %arg8[%c0_54, %c0_55], %64 {strides = array<i32>} : memref<8x8xf32, #tpu.memory_space<vmem>>, vector<8x8xf32>,
    return
  }
  func.func @transform_0(%arg0: i32) -> (i32, i32) {
    %c0_i32 = arith.constant 0 : i32
    %c0_i32_0 = arith.constant 0 : i32
    return %arg0, %c0_i32 : i32, i32
  }
  func.func @transform_1(%arg0: i32) -> (i32, i32) {
    %c0_i32 = arith.constant 0 : i32
    %c0_i32_0 = arith.constant 0 : i32
    %c0_i32_1 = arith.constant 0 : i32
    return %c0_i32, %c0_i32_0 : i32, i32
  }
  func.func @transform_2(%arg0: i32) -> (i32, i32) {
    %c0_i32 = arith.constant 0 : i32
    %c0_i32_0 = arith.constant 0 : i32
    %c0_i32_1 = arith.constant 0 : i32
    return %c0_i32, %c0_i32_0 : i32, i32
  }
  func.func @transform_3(%arg0: i32) -> (i32, i32) {
    %c0_i32 = arith.constant 0 : i32
    %c0_i32_0 = arith.constant 0 : i32
    %c0_i32_1 = arith.constant 0 : i32
    return %c0_i32, %c0_i32_0 : i32, i32
  }
  func.func @transform_4(%arg0: i32) -> (i32, i32) {
    %c0_i32 = arith.constant 0 : i32
    %c0_i32_0 = arith.constant 0 : i32
    %c0_i32_1 = arith.constant 0 : i32
    return %c0_i32, %c0_i32_0 : i32, i32
  }
  func.func @transform_5(%arg0: i32) -> (i32, i32) {
    %c0_i32 = arith.constant 0 : i32
    %c0_i32_0 = arith.constant 0 : i32
    %c0_i32_1 = arith.constant 0 : i32
    return %c0_i32, %c0_i32_0 : i32, i32
  }
  func.func @transform_6(%arg0: i32) -> (i32, i32) {
    %c0_i32 = arith.constant 0 : i32
    %c0_i32_0 = arith.constant 0 : i32
    %c0_i32_1 = arith.constant 0 : i32
    return %c0_i32, %c0_i32_0 : i32, i32
  }
  func.func @transform_7(%arg0: i32) -> (i32, i32) {
    %c0_i32 = arith.constant 0 : i32
    %c0_i32_0 = arith.constant 0 : i32
    return %arg0, %c0_i32 : i32, i32
  }
}

</mosaic_0001>

<bundles_post_ra>
// kernel: simple_cnn_forward.1
= control target key start
LH: loop header
LB: loop body
LE: loop exit
PB: predicated region body
PF: predicated region fallthrough
CT: control target
= control target key end

     0   :  { %s2381_s24 = smov 0   ;;  %s3178_s0 = inlined_call_operand.vmem [shape: bf16[512,24], index: 0, kind: input, shape index: {}]   ;;  %s3179_s1 = inlined_call_operand.vmem [shape: bf16[24,128], index: 1, kind: input, shape index: {}]   ;;  %s3180_s2 = inlined_call_operand.vmem [shape: f32[1,128], index: 2, kind: input, shape index: {}]   ;;  %s3181_s3 = inlined_call_operand.vmem [shape: bf16[192,128], index: 3, kind: input, shape index: {}]   ;;  %s3182_s4 = inlined_call_operand.vmem [shape: f32[1,128], index: 4, kind: input, shape index: {}]   ;;  %s3183_s5 = inlined_call_operand.vmem [shape: bf16[512,8], index: 5, kind: input, shape index: {}]   ;;  %s3184_s6 = inlined_call_operand.vmem [shape: f32[1,8], index: 6, kind: input, shape index: {}]   ;;  %s3185_s7 = inlined_call_operand.vmem [shape: f32[16,8], index: 7, kind: output, shape index: {}]  }
   0x1 LB: > { %s2387_s25 = sadd.s32 4294967295, %s2336_s24   ;;  %p2013_p0 = scmp.ge.s32.totalorder %s2336_s24, 1  ;;  %s2336_s24 = sphi %s2381_s24, %s17_s24  }
   0x2   : > { %p238_p1 = scmp.lt.s32.totalorder %s2336_s24, 3 }
   0x4   : > { %p239_p2 = pnand %p2013_p0, %p238_p1 }
   0x5   : > { %s2014_s30 = sshll.u32 (!%p239_p2), %s2387_s25, 5  ;;  %s2338_s14 = smov (!%p239_p2), 64  }
   0x6   : > { %242 = sbr.rel (%p239_p2) target bundleno = 1226 (0x4ca), region = 48  ;;  %p270_p3 = scmp.lt.s32.totalorder (!%p239_p2), %s2014_s30, 63 }
   0x7   : > { %p275_p4 = scmp.lt.s32.totalorder (!%p239_p2), %s2387_s25, 1 }
   0xb   : > { %v2268_v0 = vld [vmem:[%s3179_s1 + $0x8] ss:$0 sps:$4 sm:$0xff]   ;;  %vm460_vm0 = vcmask 1043456   ;;  %v2269_v1 = vld [vmem:[%s3179_s1] sm:$0xff]   ;;  %s3215_s30 = smov (!%p270_p3, %s2014_s30), 63  ;;  %vm411_vm1 = vcmask 195584  }
   0xc   : > { %2206 = vmatprep.subr.msk.bf16.mxu0 %vm460_vm0, %v2268_v0  ;;  %v462_v2 = vsel %vm460_vm0, %v2268_v0, 0  ;;  %s2015_s8 = sshll.u32 %s3215_s30, 2  ;;  %v2438_v19 = vld [vmem:[%s3180_s2] ss:$0 sm:$0xff]  ;;  %vm929_vm2 = vcmask 516096   ;;  %v2339_v35 = vmov 0.0  }
   0xd   : > { %2171 = vmatpush3.bf16.msra.mxu0 %v462_v2  ;;  %s2401_s11 = scalar_lea.vmem %s3178_s0, %s2015_s8  ;;  %930 = vst.msk [vmem:[#allocation3] sm:$0x1] %vm929_vm2, %v2339_v35  ;;  %931 = vst.msk [vmem:[#allocation3 + $0x81] sm:$0x1] %vm929_vm2, %v2339_v35  ;;  %vm817_vm3 = vcmask 523264   ;;  %s3217_s25 = smov (!%p275_p4, %s2387_s25), 1 }
   0xe   : > { %2172 = vmatprep.subr.bf16.mxu0 %v2269_v1  ;;  %v2270_v3 = vld [vmem:[%s2401_s11] sm:$0xff]   ;;  %v2271_v4 = vld [vmem:[%s2401_s11 + $0x8] sm:$0xff]   ;;  %v2272_v5 = vld [vmem:[%s2401_s11 + $0x10] sm:$0xff]   ;;  %s2016_s27 = sshll.u32 %s3217_s25, 3 }
   0xf   : > { %2174 = vmatprep.mubr.msk.bf16.mxu0 %vm411_vm1, %v2270_v3  ;;  %v2273_v6 = vld [vmem:[%s2401_s11 + $0x18] sm:$0xff]   ;;  %v2274_v7 = vld [vmem:[%s2401_s11 + $0x20] sm:$0xff]   ;;  %v2275_v8 = vld [vmem:[%s2401_s11 + $0x28] sm:$0xff]   ;;  %s278_s30 = scalar_lea.vmem %s3185_s7, %s2016_s27 }
  0x10   : > { %v2276_v9 = vld [vmem:[%s2401_s11 + $0x30] sm:$0xff]   ;;  %v2277_v10 = vld [vmem:[%s2401_s11 + $0x38] sm:$0xff]   ;;  %v2278_v11 = vld [vmem:[%s2401_s11 + $0x40] sm:$0xff]  }
  0x11   : > { %2173 = vmatpush3.bf16.msra.mxu0 %v2269_v1  ;;  %v2279_v12 = vld [vmem:[%s2401_s11 + $0x48] sm:$0xff]   ;;  %v2280_v13 = vld [vmem:[%s2401_s11 + $0x50] sm:$0xff]   ;;  %v2281_v14 = vld [vmem:[%s2401_s11 + $0x58] sm:$0xff]  }
  0x12   : > { %v2282_v15 = vld [vmem:[%s2401_s11 + $0x60] sm:$0xff]   ;;  %v2283_v16 = vld [vmem:[%s2401_s11 + $0x68] sm:$0xff]   ;;  %v2284_v17 = vld [vmem:[%s2401_s11 + $0x70] sm:$0xff]  }
  0x13   : > { %v2285_v18 = vld [vmem:[%s2401_s11 + $0x78] sm:$0xff]  }
  0x14   : > { %2175 = vmatmul.mubr.msk.bf16.vlgmr.msra.gmra.mxu0 %vm411_vm1, %v2271_v4 }
  0x15   : > { %2178 = vmatprep.mubr.msk.bf16.mxu0 %vm411_vm1, %v2272_v5 }
  0x1c   : > { %2179 = vmatmul.mubr.msk.bf16.gmra.mxu0 %vm411_vm1, %v2273_v6 }
  0x1d   : > { %2182 = vmatprep.mubr.msk.bf16.mxu0 %vm411_vm1, %v2274_v7 }
  0x24   : > { %2183 = vmatmul.mubr.msk.bf16.gmra.mxu0 %vm411_vm1, %v2275_v8 }
  0x25   : > { %2186 = vmatprep.mubr.msk.bf16.mxu0 %vm411_vm1, %v2276_v9 }
  0x2c   : > { %2187 = vmatmul.mubr.msk.bf16.gmra.mxu0 %vm411_vm1, %v2277_v10 }
  0x2d   : > { %2190 = vmatprep.mubr.msk.bf16.mxu0 %vm411_vm1, %v2278_v11 }
  0x34   : > { %2191 = vmatmul.mubr.msk.bf16.gmra.mxu0 %vm411_vm1, %v2279_v12 }
  0x35   : > { %2194 = vmatprep.mubr.msk.bf16.mxu0 %vm411_vm1, %v2280_v13 }
  0x3c   : > { %2195 = vmatmul.mubr.msk.bf16.gmra.mxu0 %vm411_vm1, %v2281_v14 }
  0x3d   : > { %2198 = vmatprep.mubr.msk.bf16.mxu0 %vm411_vm1, %v2282_v15 }
  0x44   : > { %2199 = vmatmul.mubr.msk.bf16.gmra.mxu0 %vm411_vm1, %v2283_v16 }
  0x45   : > { %2202 = vmatprep.mubr.msk.bf16.mxu0 %vm411_vm1, %v2284_v17 }
  0x4c   : > { %2203 = vmatmul.mubr.msk.bf16.gmra.mxu0 %vm411_vm1, %v2285_v18 }
  0xd4   : > { %v2176_v20 = vpop.f32.mrf.mxu0 }
  0xd5   : > { %v2441_v21 = vadd.f32 %v2176_v20, %v2438_v19 }
  0xd6   : > { %v498_v22 = vpop.f32.mrf.mxu0 }
  0xd7   : > { %v627_v23 = vmax.f32 %v2441_v21, 0.0  ;;  %v2445_v24 = vadd.f32 %v2438_v19, %v498_v22  ;;  %v2297_v21 = vld [vmem:[%s3181_s3 + $0x40] sm:$0xff]  }
  0xd8   : > { %v2177_v25 = vpop.f32.mrf.mxu0 }
  0xd9   : > { %v625_v26 = vmax.f32 %v2445_v24, 0.0  ;;  %v2449_v27 = vadd.f32 %v2177_v25, %v2438_v19  ;;  %693 = vrot.lane.b32.xlu1 %v627_v23, %s2338_s14 }
  0xda   : > { %v501_v28 = vpop.f32.mrf.mxu0 }
  0xdb   : > { %v628_v29 = vmax.f32 %v2449_v27, 0.0  ;;  %v2456_v30 = vadd.f32 %v2438_v19, %v501_v28  ;;  %689 = vrot.lane.b32.xlu0 %v625_v26, %s2338_s14 }
  0xdc   : > { %v2180_v31 = vpop.f32.mrf.mxu0 }
  0xdd   : > { %v626_v32 = vmax.f32 %v2456_v30, 0.0  ;;  %v2463_v33 = vadd.f32 %v2180_v31, %v2438_v19  ;;  %695 = vrot.lane.b32.xlu1 %v628_v29, %s2338_s14 }
  0xde   : > { %v514_v34 = vpop.f32.mrf.mxu0 }
  0xdf   : > { %691 = vrot.lane.b32.xlu0 %v626_v32, %s2338_s14  ;;  %v631_v37 = vmax.f32 %v2463_v33, 0.0  ;;  %v2473_v38 = vadd.f32 %v2438_v19, %v514_v34 }
  0xe0   : > { %v2181_v36 = vpop.f32.mrf.mxu0 }
  0xe1   : > { %v2476_v39 = vadd.f32 %v2181_v36, %v2438_v19  ;;  %v629_v44 = vmax.f32 %v2473_v38, 0.0 }
  0xe2   : > { %v517_v40 = vpop.f32.mrf.mxu0 }
  0xe3   : > { %v632_v41 = vmax.f32 %v2476_v39, 0.0  ;;  %v2480_v42 = vadd.f32 %v2438_v19, %v517_v40  ;;  %701 = vrot.lane.b32.xlu0 %v631_v37, %s2338_s14 }
  0xe4   : > { %v2184_v43 = vpop.f32.mrf.mxu0 }
  0xe5   : > { %v2487_v45 = vadd.f32 %v2184_v43, %v2438_v19  ;;  %703 = vrot.lane.b32.xlu1 %v632_v41, %s2338_s14  ;;  %v630_v47 = vmax.f32 %v2480_v42, 0.0 }
  0xe6   : > { %v530_v46 = vpop.f32.mrf.mxu0 }
  0xe7   : > { %697 = vrot.lane.b32.xlu0 %v629_v44, %s2338_s14  ;;  %v635_v49 = vmax.f32 %v2487_v45, 0.0  ;;  %v2498_v50 = vadd.f32 %v2438_v19, %v530_v46 }
  0xe8   : > { %v2185_v48 = vpop.f32.mrf.mxu0 }
  0xe9   : > { %v2501_v51 = vadd.f32 %v2185_v48, %v2438_v19  ;;  %699 = vrot.lane.b32.xlu1 %v630_v47, %s2338_s14  ;;  %v633_v56 = vmax.f32 %v2498_v50, 0.0 }
  0xea   : > { %v533_v52 = vpop.f32.mrf.mxu0 }
  0xeb   : > { %v636_v53 = vmax.f32 %v2501_v51, 0.0  ;;  %v2508_v54 = vadd.f32 %v2438_v19, %v533_v52  ;;  %709 = vrot.lane.b32.xlu0 %v635_v49, %s2338_s14 }
  0xec   : > { %v2188_v55 = vpop.f32.mrf.mxu0 }
  0xed   : > { %v2515_v57 = vadd.f32 %v2188_v55, %v2438_v19  ;;  %711 = vrot.lane.b32.xlu1 %v636_v53, %s2338_s14  ;;  %v634_v59 = vmax.f32 %v2508_v54, 0.0 }
  0xee   : > { %v546_v58 = vpop.f32.mrf.mxu0 }
  0xef   : > { %705 = vrot.lane.b32.xlu0 %v633_v56, %s2338_s14  ;;  %v639_v61 = vmax.f32 %v2515_v57, 0.0  ;;  %v2526_v62 = vadd.f32 %v2438_v19, %v546_v58 }
  0xf0   : > { %v2189_v60 = vpop.f32.mrf.mxu0 }
  0xf1   : > { %v2529_v63 = vadd.f32 %v2189_v60, %v2438_v19  ;;  %707 = vrot.lane.b32.xlu1 %v634_v59, %s2338_s14  ;;  %v637_v4 = vmax.f32 %v2526_v62, 0.0 }
  0xf2   : > { %v549_v0 = vpop.f32.mrf.mxu0 }
  0xf3   : > { %v640_v1 = vmax.f32 %v2529_v63, 0.0  ;;  %v2536_v2 = vadd.f32 %v2438_v19, %v549_v0  ;;  %717 = vrot.lane.b32.xlu0 %v639_v61, %s2338_s14 }
  0xf4   : > { %v2192_v3 = vpop.f32.mrf.mxu0 }
  0xf5   : > { %v2543_v5 = vadd.f32 %v2192_v3, %v2438_v19  ;;  %719 = vrot.lane.b32.xlu1 %v640_v1, %s2338_s14  ;;  %v638_v7 = vmax.f32 %v2536_v2, 0.0 }
  0xf6   : > { %v562_v6 = vpop.f32.mrf.mxu0 }
  0xf7   : > { %713 = vrot.lane.b32.xlu0 %v637_v4, %s2338_s14  ;;  %v643_v9 = vmax.f32 %v2543_v5, 0.0  ;;  %v2554_v10 = vadd.f32 %v2438_v19, %v562_v6 }
  0xf8   : > { %v2193_v8 = vpop.f32.mrf.mxu0 }
  0xf9   : > { %v2557_v11 = vadd.f32 %v2193_v8, %v2438_v19  ;;  %715 = vrot.lane.b32.xlu1 %v638_v7, %s2338_s14  ;;  %v641_v16 = vmax.f32 %v2554_v10, 0.0 }
  0xfa   : > { %v565_v12 = vpop.f32.mrf.mxu0 }
  0xfb   : > { %v644_v13 = vmax.f32 %v2557_v11, 0.0  ;;  %v2564_v14 = vadd.f32 %v2438_v19, %v565_v12  ;;  %725 = vrot.lane.b32.xlu0 %v643_v9, %s2338_s14 }
  0xfc   : > { %v2196_v15 = vpop.f32.mrf.mxu0 }
  0xfd   : > { %v2571_v17 = vadd.f32 %v2196_v15, %v2438_v19  ;;  %727 = vrot.lane.b32.xlu1 %v644_v13, %s2338_s14  ;;  %v642_v20 = vmax.f32 %v2564_v14, 0.0 }
  0xfe   : > { %v578_v18 = vpop.f32.mrf.mxu0 }
  0xff   : > { %721 = vrot.lane.b32.xlu0 %v641_v16, %s2338_s14  ;;  %v647_v25 = vmax.f32 %v2571_v17, 0.0  ;;  %v2582_v28 = vadd.f32 %v2438_v19, %v578_v18 }
 0x100   : > { %v2197_v22 = vpop.f32.mrf.mxu0 }
 0x101   : > { %v2585_v31 = vadd.f32 %v2197_v22, %v2438_v19  ;;  %723 = vrot.lane.b32.xlu1 %v642_v20, %s2338_s14  ;;  %v645_v43 = vmax.f32 %v2582_v28, 0.0 }
 0x102   : > { %v581_v34 = vpop.f32.mrf.mxu0 }
 0x103   : > { %v648_v35 = vmax.f32 %v2585_v31, 0.0  ;;  %v2592_v36 = vadd.f32 %v2438_v19, %v581_v34  ;;  %733 = vrot.lane.b32.xlu0 %v647_v25, %s2338_s14 }
 0x104   : > { %v2200_v40 = vpop.f32.mrf.mxu0 }
 0x105   : > { %v2599_v46 = vadd.f32 %v2200_v40, %v2438_v19  ;;  %735 = vrot.lane.b32.xlu1 %v648_v35, %s2338_s14  ;;  %v3194_v52 = vmax.f32 %v2592_v36, 0.0  ;;  %v3195_v31 = vmax.f32 %v2592_v36, 0.0 }
 0x106   : > { %v594_v48 = vpop.f32.mrf.mxu0 }
 0x107   : > { %729 = vrot.lane.b32.xlu0 %v645_v43, %s2338_s14  ;;  %v3193_v58 = vmax.f32 %v2599_v46, 0.0  ;;  %v2610_v60 = vadd.f32 %v2438_v19, %v594_v48 }
 0x108   : > { %v2201_v55 = vpop.f32.mrf.mxu0 }
 0x109   : > { %v2613_v0 = vadd.f32 %v2201_v55, %v2438_v19  ;;  %731 = vrot.lane.b32.xlu1 %v3194_v52, %s2338_s14  ;;  %v3187_v15 = vmax.f32 %v2610_v60, 0.0 }
 0x10a   : > { %v597_v3 = vpop.f32.mrf.mxu0 }
 0x10b   : > { %v3186_v6 = vmax.f32 %v2613_v0, 0.0  ;;  %v2620_v8 = vadd.f32 %v2438_v19, %v597_v3  ;;  %741 = vrot.lane.b32.xlu0 %v3193_v58, %s2338_s14 }
 0x10c   : > { %v2204_v12 = vpop.f32.mrf.mxu0 }
 0x10d   : > { %743 = vrot.lane.b32.xlu1 %v3186_v6, %s2338_s14  ;;  %v3192_v22 = vmax.f32 %v2620_v8, 0.0  ;;  %v2637_v48 = vadd.f32 %v2204_v12, %v2438_v19 }
 0x10e   : > { %v610_v18 = vpop.f32.mrf.mxu0 }
 0x10f   : > { %v2631_v34 = vadd.f32 %v2438_v19, %v610_v18  ;;  %737 = vrot.lane.b32.xlu0 %v3187_v15, %s2338_s14  ;;  %v3189_v18 = vmax.f32 %v2637_v48, 0.0 }
 0x110   : > { %v2205_v40 = vpop.f32.mrf.mxu0 }
 0x111   : > { %v3191_v55 = vmax.f32 %v2631_v34, 0.0  ;;  %739 = vrot.lane.b32.xlu1 %v3192_v22, %s2338_s14  ;;  %v2651_v15 = vadd.f32 %v2205_v40, %v2438_v19  ;;  %v2340_v40 = vmov 0  }
 0x112   : > { %v613_v3 = vpop.f32.mrf.mxu0  ;;  %1300 = vmatprep.subr.bf16.mxu1 %v2340_v40 }
 0x113   : > { %v2644_v6 = vadd.f32 %v2438_v19, %v613_v3  ;;  %745 = vrot.lane.b32.xlu0 %v3191_v55, %s2338_s14  ;;  %v3190_v3 = vmax.f32 %v2651_v15, 0.0  ;;  %v2286_v19 = vld [vmem:[%s3181_s3 + $0x38] sm:$0xff]  }
 0x114   : > { %1301 = vmatpush1.bf16.msra.mxu1 %v2286_v19  ;;  %v2290_v19 = vld [vmem:[%s3181_s3 + $0x18] sm:$0xff]  }
 0x115   : > { %v3188_v12 = vmax.f32 %v2644_v6, 0.0  ;;  %1302 = vmatprep.subr.bf16.mxu1 %v2340_v40 }
 0x117   : > { %747 = vrot.lane.b32.xlu1 %v3188_v12, %s2338_s14  ;;  %749 = vrot.lane.b32.xlu0 %v3189_v18, %s2338_s14  ;;  %v2287_v12 = vld [vmem:[%s3181_s3 + $0x30] sm:$0xff]   ;;  %v2288_v18 = vld [vmem:[%s3181_s3 + $0x28] sm:$0xff]  }
 0x118   : > { %1303 = vmatpush1.bf16.msra.mxu1 %v2287_v12  ;;  %v2291_v12 = vld [vmem:[%s3181_s3 + $0x10] sm:$0xff]  }
 0x119   : > { %1304 = vmatprep.subr.bf16.mxu1 %v2340_v40 }
 0x11b   : > { %751 = vrot.lane.b32.xlu1 %v3190_v3, %s2338_s14  ;;  %v2289_v3 = vld [vmem:[%s3181_s3 + $0x20] sm:$0xff]  }
 0x11c   : > { %1305 = vmatpush1.bf16.msra.mxu1 %v2288_v18  ;;  %v2292_v18 = vld [vmem:[%s3181_s3 + $0x8] sm:$0xff]  }
 0x11d   : > { %1306 = vmatprep.subr.bf16.mxu1 %v2340_v40 }
 0x120   : > { %1307 = vmatpush1.bf16.msra.mxu1 %v2289_v3  ;;  %v2293_v3 = vld [vmem:[%s3181_s3] sm:$0xff]  }
 0x121   : > { %1308 = vmatprep.subr.bf16.mxu1 %v2340_v40 }
 0x124   : > { %1309 = vmatpush1.bf16.msra.mxu1 %v2290_v19  ;;  %v2294_v19 = vld [vmem:[%s3181_s3 + $0x58] sm:$0xff]  }
 0x125   : > { %1310 = vmatprep.subr.bf16.mxu1 %v2340_v40 }
 0x128   : > { %1311 = vmatpush1.bf16.msra.mxu1 %v2291_v12  ;;  %v2295_v12 = vld [vmem:[%s3181_s3 + $0x50] sm:$0xff]  }
 0x129   : > { %1312 = vmatprep.subr.bf16.mxu1 %v2340_v40 }
 0x12c   : > { %1313 = vmatpush1.bf16.msra.mxu1 %v2292_v18  ;;  %v2296_v18 = vld [vmem:[%s3181_s3 + $0x48] sm:$0xff]  }
 0x12d   : > { %1314 = vmatprep.subr.bf16.mxu1 %v2340_v40 }
 0x130   : > { %1315 = vmatpush1.bf16.msra.mxu1 %v2293_v3 }
 0x131   : > { %1324 = vmatprep.subr.bf16.mxu1 %v2340_v40 }
 0x134   : > { %1325 = vmatpush2.bf16.msra.mxu1 %v2294_v19 }
 0x135   : > { %1326 = vmatprep.subr.bf16.mxu1 %v2340_v40 }
 0x138   : > { %1327 = vmatpush2.bf16.msra.mxu1 %v2295_v12 }
 0x139   : > { %1328 = vmatprep.subr.bf16.mxu1 %v2340_v40 }
 0x13c   : > { %1329 = vmatpush2.bf16.msra.mxu1 %v2296_v18 }
 0x13d   : > { %1330 = vmatprep.subr.bf16.mxu1 %v2340_v40 }
 0x140   : > { %1331 = vmatpush2.bf16.msra.mxu1 %v2297_v21 }
 0x14b   : > { %v694_v3 = vpop.permute.xlu1 %693 }
 0x14c   : > { %v787_v55 = vmax.f32 %v627_v23, %v694_v3  ;;  %v948_v3 = vlaneseq }
 0x14d   : > { %v690_v22 = vpop.permute.xlu0 %689 }
 0x14e   : > { %820 = vst.msk [vmem:[#allocation2 + $0x10] sm:$0xff] %vm817_vm3, %v787_v55  ;;  %v785_v19 = vmax.f32 %v625_v26, %v690_v22  ;;  %v2735_v21 = vshrl.u32 %v948_v3, 7 }
 0x14f   : > { %v696_v58 = vpop.permute.xlu1 %695 }
 0x150   : > { %818 = vst.msk [vmem:[#allocation2] sm:$0xff] %vm817_vm3, %v785_v19  ;;  %v788_v12 = vmax.f32 %v628_v29, %v696_v58 }
 0x151   : > { %v692_v52 = vpop.permute.xlu0 %691 }
 0x152   : > { %821 = vst.msk [vmem:[#allocation2 + $0x18] sm:$0xff] %vm817_vm3, %v788_v12  ;;  %v786_v40 = vmax.f32 %v626_v32, %v692_v52 }
 0x154   : > { %819 = vst.msk [vmem:[#allocation2 + $0x8] sm:$0xff] %vm817_vm3, %v786_v40 }
 0x155   : > { %v702_v23 = vpop.permute.xlu0 %701 }
 0x156   : > { %v791_v24 = vmax.f32 %v631_v37, %v702_v23 }
 0x157   : > { %v704_v26 = vpop.permute.xlu1 %703 }
 0x158   : > { %824 = vst.msk [vmem:[#allocation2 + $0x30] sm:$0xff] %vm817_vm3, %v791_v24  ;;  %v792_v27 = vmax.f32 %v632_v41, %v704_v26  ;;  %v950_v26 = vadd.s32 8, %v2735_v21 }
 0x159   : > { %v698_v29 = vpop.permute.xlu0 %697  ;;  %v852_v30 = vld [vmem:[#allocation2 + $0x10] ss:$2 sm:$0xff]  ;;  %v884_v32 = vld [vmem:[#allocation2 + $0x11] ss:$2 sm:$0xff] }
 0x15a   : > { %825 = vst.msk [vmem:[#allocation2 + $0x38] sm:$0xff] %vm817_vm3, %v792_v27  ;;  %v789_v52 = vmax.f32 %v629_v44, %v698_v29  ;;  %v914_v58 = vmax.f32 %v852_v30, %v884_v32 }
 0x15b   : > { %v700_v22 = vpop.permute.xlu1 %699  ;;  %v850_v55 = vld [vmem:[#allocation2] ss:$2 sm:$0xff]  ;;  %v882_v18 = vld [vmem:[#allocation2 + $0x1] ss:$2 sm:$0xff] }
 0x15c   : > { %822 = vst.msk [vmem:[#allocation2 + $0x20] sm:$0xff] %vm817_vm3, %v789_v52  ;;  %v790_v33 = vmax.f32 %v630_v47, %v700_v22  ;;  %v913_v37 = vmax.f32 %v850_v55, %v882_v18  ;;  %933 = vst.msk [vmem:[#allocation3 + $0x9] sm:$0xff] %vm817_vm3, %v914_v58  ;;  %v966_v52 = vand.u32 15, %v950_v26  ;;  %v3196_v26 = vmax.f32 %v2599_v46, 0.0 }
 0x15d   : > { %v710_v39 = vpop.permute.xlu0 %709 }
 0x15e   : > { %823 = vst.msk [vmem:[#allocation2 + $0x28] sm:$0xff] %vm817_vm3, %v790_v33  ;;  %v795_v41 = vmax.f32 %v635_v49, %v710_v39  ;;  %v2218_v38 = vpack.i.bf16 %v914_v58, %v913_v37  ;;  %932 = vst.msk [vmem:[#allocation3 + $0x1] sm:$0xff] %vm817_vm3, %v913_v37  ;;  %vm1030_vm4 = vcmp.eq.s32.totalorder %v966_v52, 15 }
 0x15f   : > { %v712_v44 = vpop.permute.xlu1 %711 }
 0x160   : > { %828 = vst.msk [vmem:[#allocation2 + $0x50] sm:$0xff] %vm817_vm3, %v795_v41  ;;  %v796_v42 = vmax.f32 %v636_v53, %v712_v44  ;;  %2219 = vrot.lane.b32.xlu0 %v2218_v38, %s2338_s14 }
 0x161   : > { %v706_v47 = vpop.permute.xlu0 %705  ;;  %v856_v19 = vld [vmem:[#allocation2 + $0x30] ss:$2 sm:$0xff]  ;;  %v888_v12 = vld [vmem:[#allocation2 + $0x31] ss:$2 sm:$0xff] }
 0x162   : > { %829 = vst.msk [vmem:[#allocation2 + $0x58] sm:$0xff] %vm817_vm3, %v796_v42  ;;  %v793_v45 = vmax.f32 %v633_v56, %v706_v47  ;;  %v916_v49 = vmax.f32 %v856_v19, %v888_v12 }
 0x163   : > { %v708_v40 = vpop.permute.xlu1 %707 }
 0x164   : > { %826 = vst.msk [vmem:[#allocation2 + $0x40] sm:$0xff] %vm817_vm3, %v793_v45  ;;  %v794_v51 = vmax.f32 %v634_v59, %v708_v40  ;;  %935 = vst.msk [vmem:[#allocation3 + $0x19] sm:$0xff] %vm817_vm3, %v916_v49 }
 0x165   : > { %v718_v53 = vpop.permute.xlu0 %717  ;;  %v854_v23 = vld [vmem:[#allocation2 + $0x20] ss:$2 sm:$0xff]  ;;  %v886_v24 = vld [vmem:[#allocation2 + $0x21] ss:$2 sm:$0xff] }
 0x166   : > { %827 = vst.msk [vmem:[#allocation2 + $0x48] sm:$0xff] %vm817_vm3, %v794_v51  ;;  %v799_v50 = vmax.f32 %v639_v61, %v718_v53  ;;  %v915_v56 = vmax.f32 %v854_v23, %v886_v24  ;;  %v1045_v37 = vld [vmem:[#allocation3 + $0x2] sm:$0xff] }
 0x167   : > { %v720_v27 = vpop.permute.xlu1 %719 }
 0x168   : > { %832 = vst.msk [vmem:[#allocation2 + $0x70] sm:$0xff] %vm817_vm3, %v799_v50  ;;  %v800_v54 = vmax.f32 %v640_v1, %v720_v27  ;;  %v2223_v59 = vpack.i.bf16 %v916_v49, %v915_v56  ;;  %934 = vst.msk [vmem:[#allocation3 + $0x11] sm:$0xff] %vm817_vm3, %v915_v56  ;;  %v3197_v56 = vmax.f32 %v2613_v0, 0.0  ;;  %v3199_v0 = vmax.f32 %v2620_v8, 0.0 }
 0x169   : > { %v714_v29 = vpop.permute.xlu0 %713  ;;  %v860_v30 = vld [vmem:[#allocation2 + $0x50] ss:$2 sm:$0xff]  ;;  %v892_v32 = vld [vmem:[#allocation2 + $0x51] ss:$2 sm:$0xff] }
 0x16a   : > { %833 = vst.msk [vmem:[#allocation2 + $0x78] sm:$0xff] %vm817_vm3, %v800_v54  ;;  %v797_v57 = vmax.f32 %v637_v4, %v714_v29  ;;  %2224 = vrot.lane.b32.xlu1 %v2223_v59, %s2338_s14  ;;  %v918_v61 = vmax.f32 %v860_v30, %v892_v32  ;;  %v3198_v30 = vmax.f32 %v2610_v60, 0.0 }
 0x16b   : > { %v716_v58 = vpop.permute.xlu1 %715 }
 0x16c   : > { %830 = vst.msk [vmem:[#allocation2 + $0x60] sm:$0xff] %vm817_vm3, %v797_v57  ;;  %v798_v63 = vmax.f32 %v638_v7, %v716_v58  ;;  %937 = vst.msk [vmem:[#allocation3 + $0x29] sm:$0xff] %vm817_vm3, %v918_v61 }
 0x16d   : > { %v726_v1 = vpop.permute.xlu0 %725  ;;  %v858_v22 = vld [vmem:[#allocation2 + $0x40] ss:$2 sm:$0xff]  ;;  %v890_v55 = vld [vmem:[#allocation2 + $0x41] ss:$2 sm:$0xff] }
 0x16e   : > { %831 = vst.msk [vmem:[#allocation2 + $0x68] sm:$0xff] %vm817_vm3, %v798_v63  ;;  %v803_v62 = vmax.f32 %v643_v9, %v726_v1  ;;  %v917_v4 = vmax.f32 %v858_v22, %v890_v55  ;;  %v3200_v1 = vmax.f32 %v2631_v34, 0.0 }
 0x16f   : > { %v728_v18 = vpop.permute.xlu1 %727  ;;  %v1046_v33 = vld [vmem:[#allocation3 + $0xa] sm:$0xff] }
 0x170   : > { %836 = vst.msk [vmem:[#allocation2 + $0x90] sm:$0xff] %vm817_vm3, %v803_v62  ;;  %v804_v2 = vmax.f32 %v644_v13, %v728_v18  ;;  %v2228_v7 = vpack.i.bf16 %v918_v61, %v917_v4  ;;  %936 = vst.msk [vmem:[#allocation3 + $0x21] sm:$0xff] %vm817_vm3, %v917_v4  ;;  %v1062_v39 = vsel %vm1030_vm4, 0.0, %v1046_v33  ;;  %v3201_v33 = vmax.f32 %v2644_v6, 0.0 }
 0x171   : > { %v722_v41 = vpop.permute.xlu0 %721  ;;  %v1158_v38 = vpack.c.bf16 %v1062_v39, %v1045_v37  ;;  %v864_v44 = vld [vmem:[#allocation2 + $0x70] ss:$2 sm:$0xff]  ;;  %v896_v3 = vld [vmem:[#allocation2 + $0x71] ss:$2 sm:$0xff] }
 0x172   : > { %837 = vst.msk [vmem:[#allocation2 + $0x98] sm:$0xff] %vm817_vm3, %v804_v2  ;;  %v801_v5 = vmax.f32 %v641_v16, %v722_v41  ;;  %2229 = vrot.lane.b32.xlu0 %v2228_v7, %s2338_s14  ;;  %v920_v9 = vmax.f32 %v864_v44, %v896_v3  ;;  %v3202_v7 = vmax.f32 %v2637_v48, 0.0  ;;  %v3203_v44 = vmax.f32 %v2651_v15, 0.0 }
 0x173   : > { %v724_v42 = vpop.permute.xlu1 %723  ;;  %2065 = vmatprep.mubr.msk.bf16.mxu1 %vm817_vm3, %v1158_v38  ;;  %v952_v15 = vadd.s32 24, %v2735_v21 }
 0x174   : > { %834 = vst.msk [vmem:[#allocation2 + $0x80] sm:$0xff] %vm817_vm3, %v801_v5  ;;  %v802_v11 = vmax.f32 %v642_v20, %v724_v42  ;;  %939 = vst.msk [vmem:[#allocation3 + $0x39] sm:$0xff] %vm817_vm3, %v920_v9 }
 0x175   : > { %v734_v13 = vpop.permute.xlu0 %733  ;;  %v862_v47 = vld [vmem:[#allocation2 + $0x60] ss:$2 sm:$0xff]  ;;  %v894_v19 = vld [vmem:[#allocation2 + $0x61] ss:$2 sm:$0xff] }
 0x176   : > { %835 = vst.msk [vmem:[#allocation2 + $0x88] sm:$0xff] %vm817_vm3, %v802_v11  ;;  %v807_v10 = vmax.f32 %v647_v25, %v734_v13  ;;  %v919_v16 = vmax.f32 %v862_v47, %v894_v19 }
 0x177   : > { %v736_v12 = vpop.permute.xlu1 %735 }
 0x178   : > { %840 = vst.msk [vmem:[#allocation2 + $0xb0] sm:$0xff] %vm817_vm3, %v807_v10  ;;  %v808_v45 = vmax.f32 %v648_v35, %v736_v12  ;;  %v2233_v49 = vpack.i.bf16 %v920_v9, %v919_v16  ;;  %938 = vst.msk [vmem:[#allocation3 + $0x31] sm:$0xff] %vm817_vm3, %v919_v16  ;;  %v965_v10 = vand.u32 15, %v2735_v21  ;;  %v968_v16 = vand.u32 15, %v952_v15  ;;  %v997_v12 = vld [vmem:[#allocation3] sm:$0xff] }
 0x179   : > { %v730_v14 = vpop.permute.xlu0 %729  ;;  %v868_v20 = vld [vmem:[#allocation2 + $0x90] ss:$2 sm:$0xff]  ;;  %v900_v40 = vld [vmem:[#allocation2 + $0x91] ss:$2 sm:$0xff] }
 0x17a   : > { %841 = vst.msk [vmem:[#allocation2 + $0xb8] sm:$0xff] %vm817_vm3, %v808_v45  ;;  %v805_v51 = vmax.f32 %v645_v43, %v730_v14  ;;  %2234 = vrot.lane.b32.xlu1 %v2233_v49, %s2338_s14  ;;  %v922_v17 = vmax.f32 %v868_v20, %v900_v40  ;;  %vm981_vm5 = vcmp.eq.s32.totalorder %v965_v10, 0  ;;  %vm1032_vm6 = vcmp.eq.s32.totalorder %v968_v16, 15  ;;  %v1048_v45 = vld [vmem:[#allocation3 + $0x1a] sm:$0xff] }
 0x17b   : > { %v732_v25 = vpop.permute.xlu1 %731  ;;  %v951_v40 = vadd.s32 16, %v2735_v21 }
 0x17c   : > { %838 = vst.msk [vmem:[#allocation2 + $0xa0] sm:$0xff] %vm817_vm3, %v805_v51  ;;  %v806_v35 = vmax.f32 %v3195_v31, %v732_v25  ;;  %941 = vst.msk [vmem:[#allocation3 + $0x49] sm:$0xff] %vm817_vm3, %v922_v17  ;;  %v954_v51 = vadd.s32 40, %v2735_v21  ;;  %v1013_v25 = vsel %vm981_vm5, 0.0, %v997_v12  ;;  %v1064_v31 = vsel %vm1032_vm6, 0.0, %v1048_v45 }
 0x17d   : > { %v742_v53 = vpop.permute.xlu0 %741  ;;  %v866_v23 = vld [vmem:[#allocation2 + $0x80] ss:$2 sm:$0xff]  ;;  %v898_v24 = vld [vmem:[#allocation2 + $0x81] ss:$2 sm:$0xff] }
 0x17e   : > { %839 = vst.msk [vmem:[#allocation2 + $0xa8] sm:$0xff] %vm817_vm3, %v806_v35  ;;  %v811_v28 = vmax.f32 %v3196_v26, %v742_v53  ;;  %v921_v43 = vmax.f32 %v866_v23, %v898_v24  ;;  %v1047_v24 = vld [vmem:[#allocation3 + $0x12] sm:$0xff] }
 0x17f   : > { %v744_v50 = vpop.permute.xlu1 %743  ;;  %v1160_v26 = vpack.c.bf16 %v1064_v31, %v1047_v24  ;;  %v1004_v10 = vld [vmem:[#allocation3 + $0x38] sm:$0xff] }
 0x180   : > { %844 = vst.msk [vmem:[#allocation2 + $0xd0] sm:$0xff] %vm817_vm3, %v811_v28  ;;  %v812_v27 = vmax.f32 %v3197_v56, %v744_v50  ;;  %v2238_v54 = vpack.i.bf16 %v922_v17, %v921_v43  ;;  %940 = vst.msk [vmem:[#allocation3 + $0x41] sm:$0xff] %vm817_vm3, %v921_v43  ;;  %v998_v17 = vld [vmem:[#allocation3 + $0x8] sm:$0xff]  ;;  %v967_v28 = vand.u32 15, %v951_v40  ;;  %v970_v43 = vand.u32 15, %v954_v51  ;;  %v999_v50 = vld [vmem:[#allocation3 + $0x10] sm:$0xff] }
 0x181   : > { %v738_v36 = vpop.permute.xlu0 %737  ;;  %v872_v59 = vld [vmem:[#allocation2 + $0xb0] ss:$2 sm:$0xff]  ;;  %v904_v29 = vld [vmem:[#allocation2 + $0xb1] ss:$2 sm:$0xff] }
 0x182   : > { %845 = vst.msk [vmem:[#allocation2 + $0xd8] sm:$0xff] %vm817_vm3, %v812_v27  ;;  %v809_v32 = vmax.f32 %v3198_v30, %v738_v36  ;;  %2239 = vrot.lane.b32.xlu0 %v2238_v54, %s2338_s14  ;;  %v924_v46 = vmax.f32 %v872_v59, %v904_v29  ;;  %vm983_vm7 = vcmp.eq.s32.totalorder %v967_v28, 0  ;;  %vm2831_vm8 = vcmp.eq.s32.totalorder %v970_v43, 15  ;;  %v1050_v27 = vld [vmem:[#allocation3 + $0x2a] sm:$0xff] }
 0x183   : > { %v740_v52 = vpop.permute.xlu1 %739  ;;  %v953_v54 = vadd.s32 32, %v2735_v21  ;;  %v956_v36 = vadd.s32 56, %v2735_v21 }
 0x184   : > { %842 = vst.msk [vmem:[#allocation2 + $0xc0] sm:$0xff] %vm817_vm3, %v809_v32  ;;  %v810_v57 = vmax.f32 %v3199_v0, %v740_v52  ;;  %943 = vst.msk [vmem:[#allocation3 + $0x59] sm:$0xff] %vm817_vm3, %v924_v46  ;;  %v1000_v32 = vld [vmem:[#allocation3 + $0x18] sm:$0xff]  ;;  %v1066_v52 = vsel %vm2831_vm8, 0.0, %v1050_v27 }
 0x185   : > { %v746_v61 = vpop.permute.xlu0 %745  ;;  %v870_v58 = vld [vmem:[#allocation2 + $0xa0] ss:$2 sm:$0xff]  ;;  %v902_v63 = vld [vmem:[#allocation2 + $0xa1] ss:$2 sm:$0xff] }
 0x186   : > { %843 = vst.msk [vmem:[#allocation2 + $0xc8] sm:$0xff] %vm817_vm3, %v810_v57  ;;  %v813_v60 = vmax.f32 %v3200_v1, %v746_v61  ;;  %v923_v22 = vmax.f32 %v870_v58, %v902_v63  ;;  %v969_v61 = vand.u32 15, %v953_v54  ;;  %v972_v58 = vand.u32 15, %v956_v36  ;;  %v1049_v1 = vld [vmem:[#allocation3 + $0x22] sm:$0xff] }
 0x187   : > { %v1053_v51 = vld [vmem:[#allocation3 + $0x42] sm:$0xff] }
 0x188   : > { %846 = vst.msk [vmem:[#allocation2 + $0xe0] sm:$0xff] %vm817_vm3, %v813_v60  ;;  %v2243_v55 = vpack.i.bf16 %v924_v46, %v923_v22  ;;  %942 = vst.msk [vmem:[#allocation3 + $0x51] sm:$0xff] %vm817_vm3, %v923_v22  ;;  %v1015_v46 = vsel %vm983_vm7, 0.0, %v999_v50  ;;  %v1162_v60 = vpack.c.bf16 %v1066_v52, %v1049_v1  ;;  %vm985_vm9 = vcmp.eq.s32.totalorder %v969_v61, 0  ;;  %v1001_v22 = vld [vmem:[#allocation3 + $0x20] sm:$0xff]  ;;  %v1006_v43 = vld [vmem:[#allocation3 + $0x48] sm:$0xff] }
 0x189   : > { %v748_v62 = vpop.permute.xlu1 %747  ;;  %v750_v4 = vpop.permute.xlu0 %749  ;;  %v876_v8 = vld [vmem:[#allocation2 + $0xd0] ss:$2 sm:$0xff]  ;;  %v908_v18 = vld [vmem:[#allocation2 + $0xd1] ss:$2 sm:$0xff]  ;;  %vm2842_vm10 = vcmp.eq.s32.totalorder %v972_v58, 15  ;;  %v964_v61 = vadd.s32 120, %v2735_v21 }
 0x18a   : > { %v814_v2 = vmax.f32 %v3201_v33, %v748_v62  ;;  %v815_v37 = vmax.f32 %v3202_v7, %v750_v4  ;;  %2244 = vrot.lane.b32.xlu1 %v2243_v55, %s2338_s14  ;;  %v926_v34 = vmax.f32 %v876_v8, %v908_v18  ;;  %v1052_v62 = vld [vmem:[#allocation3 + $0x3a] sm:$0xff]  ;;  %v955_v4 = vadd.s32 48, %v2735_v21  ;;  %v1002_v7 = vld [vmem:[#allocation3 + $0x28] sm:$0xff] }
 0x18b   : > { %v958_v8 = vadd.s32 72, %v2735_v21 }
 0x18c   : > { %847 = vst.msk [vmem:[#allocation2 + $0xe8] sm:$0xff] %vm817_vm3, %v814_v2  ;;  %848 = vst.msk [vmem:[#allocation2 + $0xf0] sm:$0xff] %vm817_vm3, %v815_v37  ;;  %v1017_v37 = vsel %vm985_vm9, 0.0, %v1001_v22 }
 0x18d   : > { %945 = vst.msk [vmem:[#allocation3 + $0x69] sm:$0xff] %vm817_vm3, %v926_v34  ;;  %v752_v39 = vpop.permute.xlu1 %751  ;;  %v874_v41 = vld [vmem:[#allocation2 + $0xc0] ss:$2 sm:$0xff]  ;;  %v906_v38 = vld [vmem:[#allocation2 + $0xc1] ss:$2 sm:$0xff] }
 0x18e   : > { %v816_v3 = vmax.f32 %v3203_v44, %v752_v39  ;;  %v925_v6 = vmax.f32 %v874_v41, %v906_v38  ;;  %v971_v38 = vand.u32 15, %v955_v4  ;;  %v974_v44 = vand.u32 15, %v958_v8 }
 0x190   : > { %849 = vst.msk [vmem:[#allocation2 + $0xf8] sm:$0xff] %vm817_vm3, %v816_v3  ;;  %v2248_v48 = vpack.i.bf16 %v926_v34, %v925_v6  ;;  %944 = vst.msk [vmem:[#allocation3 + $0x61] sm:$0xff] %vm817_vm3, %v925_v6  ;;  %v1068_v34 = vsel %vm2842_vm10, 0.0, %v1052_v62  ;;  %v1051_v6 = vld [vmem:[#allocation3 + $0x32] sm:$0xff]  ;;  %vm987_vm11 = vcmp.eq.s32.totalorder %v971_v38, 0  ;;  %vm2853_vm12 = vcmp.eq.s32.totalorder %v974_v44, 15 }
 0x191   : > { %v963_v44 = vadd.s32 112, %v2735_v21 }
 0x192   : > { %2249 = vrot.lane.b32.xlu0 %v2248_v48, %s2338_s14  ;;  %v1164_v48 = vpack.c.bf16 %v1068_v34, %v1051_v6 }
 0x193   : > { %v878_v5 = vld [vmem:[#allocation2 + $0xe0] ss:$2 sm:$0xff]  ;;  %v910_v9 = vld [vmem:[#allocation2 + $0xe1] ss:$2 sm:$0xff] }
 0x194   : > { %v927_v42 = vmax.f32 %v878_v5, %v910_v9  ;;  %v1003_v5 = vld [vmem:[#allocation3 + $0x30] sm:$0xff] }
 0x195   : > { %v1019_v16 = vsel %vm987_vm11, 0.0, %v1003_v5 }
 0x196   : > { %946 = vst.msk [vmem:[#allocation3 + $0x71] sm:$0xff] %vm817_vm3, %v927_v42 }
 0x197   : > { %v880_v11 = vld [vmem:[#allocation2 + $0xf0] ss:$2 sm:$0xff]  ;;  %v912_v13 = vld [vmem:[#allocation2 + $0xf1] ss:$2 sm:$0xff] }
 0x198   : > { %v928_v47 = vmax.f32 %v880_v11, %v912_v13  ;;  %v957_v11 = vadd.s32 64, %v2735_v21  ;;  %v960_v13 = vadd.s32 88, %v2735_v21 }
 0x19a   : > { %v2253_v19 = vpack.i.bf16 %v928_v47, %v927_v42  ;;  %947 = vst.msk [vmem:[#allocation3 + $0x79] sm:$0xff] %vm817_vm3, %v928_v47  ;;  %v1054_v42 = vld [vmem:[#allocation3 + $0x4a] sm:$0xff] }
 0x19b   : > { %v1070_v12 = vsel %vm2853_vm12, 0.0, %v1054_v42 }
 0x19c   : > { %2254 = vrot.lane.b32.xlu1 %v2253_v19, %s2338_s14 }
 0x1a1   : > { %v1060_v34 = vld [vmem:[#allocation3 + $0x7a] sm:$0xff] }
 0x1d2   : > { %v2220_v49 = vpop.permute.xlu0 %2219 }
 0x1d3   : > { %v2222_v14 = vunpack.i.h.bf16 %v2220_v49  ;;  %v2221_v20 = vunpack.i.l.bf16 %v2220_v49 }
 0x1d5   : > { %v1141_v35 = vsel %vm817_vm3, %v1013_v25, %v2221_v20  ;;  %v1142_v53 = vsel %vm817_vm3, %v998_v17, %v2222_v14  ;;  %v973_v14 = vand.u32 15, %v957_v11  ;;  %v976_v20 = vand.u32 15, %v960_v13  ;;  %v1005_v25 = vld [vmem:[#allocation3 + $0x40] sm:$0xff] }
 0x1d6   : > { %v1157_v23 = vpack.c.bf16 %v1142_v53, %v1141_v35  ;;  %v1166_v17 = vpack.c.bf16 %v1070_v12, %v1053_v51  ;;  %v1056_v35 = vld [vmem:[#allocation3 + $0x5a] sm:$0xff]  ;;  %v959_v53 = vadd.s32 80, %v2735_v21 }
 0x1d7   : > { %vm989_vm13 = vcmp.eq.s32.totalorder %v973_v14, 0  ;;  %vm2864_vm14 = vcmp.eq.s32.totalorder %v976_v20, 15  ;;  %v2895_v20 = vld [vmem:[%s3182_s4] ss:$0 sm:$0xff] }
 0x1d8   : > { %1333 = vmatmul.mubr.bf16.vlgmr.msra.gmra.mxu1 %v1157_v23  ;;  %v962_v23 = vadd.s32 104, %v2735_v21  ;;  %v1021_v50 = vsel %vm989_vm13, 0.0, %v1005_v25  ;;  %v1072_v56 = vsel %vm2864_vm14, 0.0, %v1056_v35  ;;  %v975_v36 = vand.u32 15, %v959_v53 }
 0x1d9   : > { %2066 = vmatprep.mubr.msk.bf16.mxu1 %vm817_vm3, %v1160_v26 }
 0x1da   : > { %vm991_vm15 = vcmp.eq.s32.totalorder %v975_v36, 0 }
 0x1dc   : > { %v2225_v59 = vpop.permute.xlu1 %2224 }
 0x1dd   : > { %v2227_v29 = vunpack.i.h.bf16 %v2225_v59  ;;  %v2226_v30 = vunpack.i.l.bf16 %v2225_v59  ;;  %v978_v59 = vand.u32 15, %v962_v23 }
 0x1df   : > { %v1143_v0 = vsel %vm817_vm3, %v1015_v46, %v2226_v30  ;;  %v1144_v57 = vsel %vm817_vm3, %v1000_v32, %v2227_v29  ;;  %v1055_v30 = vld [vmem:[#allocation3 + $0x52] sm:$0xff]  ;;  %vm2875_vm0 = vcmp.eq.s32.totalorder %v978_v59, 15 }
 0x1e0   : > { %v1159_v63 = vpack.c.bf16 %v1144_v57, %v1143_v0  ;;  %v1168_v32 = vpack.c.bf16 %v1072_v56, %v1055_v30  ;;  %v1007_v46 = vld [vmem:[#allocation3 + $0x50] sm:$0xff]  ;;  %v961_v57 = vadd.s32 96, %v2735_v21  ;;  %v1012_v21 = vld [vmem:[#allocation3 + $0x78] sm:$0xff] }
 0x1e1   : > { %v1058_v0 = vld [vmem:[#allocation3 + $0x6a] sm:$0xff]  ;;  %v1023_v22 = vsel %vm991_vm15, 0.0, %v1007_v46 }
 0x1e2   : > { %1341 = vmatmul.mubr.bf16.gmra.mxu1 %v1159_v63  ;;  %v1074_v55 = vsel %vm2875_vm0, 0.0, %v1058_v0  ;;  %v977_v8 = vand.u32 15, %v961_v57 }
 0x1e3   : > { %2067 = vmatprep.mubr.msk.bf16.mxu1 %vm817_vm3, %v1162_v60  ;;  %v1008_v60 = vld [vmem:[#allocation3 + $0x58] sm:$0xff] }
 0x1e4   : > { %v2230_v18 = vpop.permute.xlu0 %2229  ;;  %vm993_vm1 = vcmp.eq.s32.totalorder %v977_v8, 0 }
 0x1e5   : > { %v2232_v33 = vunpack.i.h.bf16 %v2230_v18  ;;  %v2231_v2 = vunpack.i.l.bf16 %v2230_v18  ;;  %v980_v18 = vand.u32 15, %v964_v61 }
 0x1e7   : > { %v1145_v39 = vsel %vm817_vm3, %v1017_v37, %v2231_v2  ;;  %v1146_v41 = vsel %vm817_vm3, %v1002_v7, %v2232_v33  ;;  %v1057_v2 = vld [vmem:[#allocation3 + $0x62] sm:$0xff]  ;;  %vm1044_vm2 = vcmp.eq.s32.totalorder %v980_v18, 15 }
 0x1e8   : > { %v1161_v3 = vpack.c.bf16 %v1146_v41, %v1145_v39  ;;  %v1170_v7 = vpack.c.bf16 %v1074_v55, %v1057_v2  ;;  %v1009_v37 = vld [vmem:[#allocation3 + $0x60] sm:$0xff]  ;;  %v1076_v5 = vsel %vm1044_vm2, 0.0, %v1060_v34 }
 0x1e9   : > { %v1025_v6 = vsel %vm993_vm1, 0.0, %v1009_v37 }
 0x1ea   : > { %1349 = vmatmul.mubr.bf16.gmra.mxu1 %v1161_v3  ;;  %v1010_v3 = vld [vmem:[#allocation3 + $0x68] sm:$0xff] }
 0x1eb   : > { %2068 = vmatprep.mubr.msk.bf16.mxu1 %vm817_vm3, %v1164_v48  ;;  %v1059_v48 = vld [vmem:[#allocation3 + $0x72] sm:$0xff] }
 0x1ec   : > { %v2235_v47 = vpop.permute.xlu1 %2234  ;;  %v1172_v13 = vpack.c.bf16 %v1076_v5, %v1059_v48 }
 0x1ed   : > { %v2237_v19 = vunpack.i.h.bf16 %v2235_v47  ;;  %v2236_v15 = vunpack.i.l.bf16 %v2235_v47  ;;  %v979_v47 = vand.u32 15, %v963_v44 }
 0x1ef   : > { %v1147_v45 = vsel %vm817_vm3, %v1019_v16, %v2236_v15  ;;  %v1148_v49 = vsel %vm817_vm3, %v1004_v10, %v2237_v19  ;;  %vm995_vm4 = vcmp.eq.s32.totalorder %v979_v47, 0  ;;  %v1011_v19 = vld [vmem:[#allocation3 + $0x70] sm:$0xff] }
 0x1f0   : > { %v1163_v40 = vpack.c.bf16 %v1148_v49, %v1147_v45  ;;  %v1027_v12 = vsel %vm995_vm4, 0.0, %v1011_v19 }
 0x1f2   : > { %1357 = vmatmul.mubr.bf16.gmra.mxu1 %v1163_v40 }
 0x1f3   : > { %2069 = vmatprep.mubr.msk.bf16.mxu1 %vm817_vm3, %v1166_v17 }
 0x1f4   : > { %v2240_v24 = vpop.permute.xlu0 %2239 }
 0x1f5   : > { %v2242_v26 = vunpack.i.h.bf16 %v2240_v24  ;;  %v2241_v28 = vunpack.i.l.bf16 %v2240_v24 }
 0x1f7   : > { %v1149_v27 = vsel %vm817_vm3, %v1021_v50, %v2241_v28  ;;  %v1150_v54 = vsel %vm817_vm3, %v1006_v43, %v2242_v26 }
 0x1f8   : > { %v1165_v29 = vpack.c.bf16 %v1150_v54, %v1149_v27 }
 0x1fa   : > { %1365 = vmatmul.mubr.bf16.gmra.mxu1 %v1165_v29 }
 0x1fb   : > { %2070 = vmatprep.mubr.msk.bf16.mxu1 %vm817_vm3, %v1168_v32 }
 0x1fc   : > { %v2245_v58 = vpop.permute.xlu1 %2244 }
 0x1fd   : > { %v2247_v63 = vunpack.i.h.bf16 %v2245_v58  ;;  %v2246_v1 = vunpack.i.l.bf16 %v2245_v58 }
 0x1ff   : > { %v1151_v62 = vsel %vm817_vm3, %v1023_v22, %v2246_v1  ;;  %v1152_v4 = vsel %vm817_vm3, %v1008_v60, %v2247_v63 }
 0x200   : > { %v1167_v33 = vpack.c.bf16 %v1152_v4, %v1151_v62 }
 0x202   : > { %1373 = vmatmul.mubr.bf16.gmra.mxu1 %v1167_v33 }
 0x203   : > { %2071 = vmatprep.mubr.msk.bf16.mxu1 %vm817_vm3, %v1170_v7 }
 0x204   : > { %v2250_v39 = vpop.permute.xlu0 %2249 }
 0x205   : > { %v2252_v41 = vunpack.i.h.bf16 %v2250_v39  ;;  %v2251_v38 = vunpack.i.l.bf16 %v2250_v39 }
 0x207   : > { %v1153_v9 = vsel %vm817_vm3, %v1025_v6, %v2251_v38  ;;  %v1154_v42 = vsel %vm817_vm3, %v1010_v3, %v2252_v41 }
 0x208   : > { %v1169_v11 = vpack.c.bf16 %v1154_v42, %v1153_v9 }
 0x20a   : > { %1381 = vmatmul.mubr.bf16.gmra.mxu1 %v1169_v11 }
 0x20b   : > { %2072 = vmatprep.mubr.msk.bf16.mxu1 %vm817_vm3, %v1172_v13 }
 0x20e   : > { %v2255_v15 = vpop.permute.xlu1 %2254 }
 0x20f   : > { %v2257_v10 = vunpack.i.h.bf16 %v2255_v15  ;;  %v2256_v16 = vunpack.i.l.bf16 %v2255_v15 }
 0x211   : > { %v1155_v45 = vsel %vm817_vm3, %v1027_v12, %v2256_v16  ;;  %v1156_v49 = vsel %vm817_vm3, %v1012_v21, %v2257_v10 }
 0x212   : > { %v1171_v14 = vpack.c.bf16 %v1156_v49, %v1155_v45 }
 0x214   : > { %1389 = vmatmul.mubr.bf16.gmra.mxu1 %v1171_v14 }
 0x298   : > { %v1334_v40 = vpop.f32.mrf.mxu1 }
 0x299   : > { %v2898_v51 = vadd.f32 %v2895_v20, %v1334_v40 }
 0x29a   : > { %v1336_v17 = vpop.f32.mrf.mxu1 }
 0x29b   : > { %v1397_v25 = vmax.f32 %v2898_v51, 0.0  ;;  %v2298_v17 = vld [vmem:[%s3183_s5 + $0x78] sm:$0xff]  }
 0x29c   : > { %v1337_v31 = vpop.f32.mrf.mxu1  ;;  %2126 = vmatprep.subr.bf16.mxu0 %v2298_v17 }
 0x29d   : > { %v2902_v35 = vadd.f32 %v2895_v20, %v1337_v31  ;;  %1429 = vrot.lane.b32.xlu0 %v1397_v25, %s2338_s14  ;;  %v2300_v31 = vld [vmem:[%s3183_s5 + $0x70] sm:$0xff]  }
 0x29e   : > { %v1339_v53 = vpop.f32.mrf.mxu1 }
 0x29f   : > { %v1398_v23 = vmax.f32 %v2902_v35, 0.0  ;;  %v2301_v53 = vld [vmem:[%s3183_s5 + $0x30] sm:$0xff]  }
 0x2a1   : > { %1431 = vrot.lane.b32.xlu1 %v1398_v23, %s2338_s14 }
 0x2a2   : > { %v1342_v24 = vpop.f32.mrf.mxu1 }
 0x2a3   : > { %v2912_v26 = vadd.f32 %v2895_v20, %v1342_v24  ;;  %v2302_v24 = vld [vmem:[%s3183_s5 + $0x68] sm:$0xff]  }
 0x2a4   : > { %v1344_v28 = vpop.f32.mrf.mxu1 }
 0x2a5   : > { %v1399_v43 = vmax.f32 %v2912_v26, 0.0  ;;  %v2303_v28 = vld [vmem:[%s3183_s5 + $0x28] sm:$0xff]  }
 0x2a6   : > { %v1345_v50 = vpop.f32.mrf.mxu1 }
 0x2a7   : > { %v2916_v56 = vadd.f32 %v2895_v20, %v1345_v50  ;;  %1433 = vrot.lane.b32.xlu0 %v1399_v43, %s2338_s14  ;;  %v2304_v50 = vld [vmem:[%s3183_s5 + $0x60] sm:$0xff]  }
 0x2a8   : > { %v1347_v27 = vpop.f32.mrf.mxu1 }
 0x2a9   : > { %v1400_v54 = vmax.f32 %v2916_v56, 0.0  ;;  %v2305_v27 = vld [vmem:[%s3183_s5 + $0x20] sm:$0xff]  }
 0x2aa   : > { %v1350_v36 = vpop.f32.mrf.mxu1 }
 0x2ab   : > { %v2923_v59 = vadd.f32 %v2895_v20, %v1350_v36  ;;  %1435 = vrot.lane.b32.xlu1 %v1400_v54, %s2338_s14  ;;  %v2306_v36 = vld [vmem:[%s3183_s5 + $0x58] sm:$0xff]  }
 0x2ac   : > { %v1352_v29 = vpop.f32.mrf.mxu1 }
 0x2ad   : > { %v1401_v30 = vmax.f32 %v2923_v59, 0.0  ;;  %v2307_v29 = vld [vmem:[%s3183_s5 + $0x18] sm:$0xff]  }
 0x2ae   : > { %v1353_v32 = vpop.f32.mrf.mxu1 }
 0x2af   : > { %v2930_v46 = vadd.f32 %v2895_v20, %v1353_v32  ;;  %1437 = vrot.lane.b32.xlu0 %v1401_v30, %s2338_s14  ;;  %v2308_v32 = vld [vmem:[%s3183_s5 + $0x50] sm:$0xff]  }
 0x2b0   : > { %v1355_v52 = vpop.f32.mrf.mxu1 }
 0x2b1   : > { %v1402_v0 = vmax.f32 %v2930_v46, 0.0  ;;  %v2309_v52 = vld [vmem:[%s3183_s5 + $0x10] sm:$0xff]  }
 0x2b2   : > { %v1358_v57 = vpop.f32.mrf.mxu1 }
 0x2b3   : > { %v2937_v61 = vadd.f32 %v2895_v20, %v1358_v57  ;;  %1439 = vrot.lane.b32.xlu1 %v1402_v0, %s2338_s14  ;;  %v2310_v57 = vld [vmem:[%s3183_s5 + $0x48] sm:$0xff]  }
 0x2b4   : > { %v1360_v58 = vpop.f32.mrf.mxu1 }
 0x2b5   : > { %v1403_v63 = vmax.f32 %v2937_v61, 0.0  ;;  %v2311_v58 = vld [vmem:[%s3183_s5 + $0x8] sm:$0xff]  }
 0x2b6   : > { %v1361_v1 = vpop.f32.mrf.mxu1 }
 0x2b7   : > { %v2944_v60 = vadd.f32 %v2895_v20, %v1361_v1  ;;  %1441 = vrot.lane.b32.xlu0 %v1403_v63, %s2338_s14  ;;  %v2312_v1 = vld [vmem:[%s3183_s5 + $0x40] sm:$0xff]  }
 0x2b8   : > { %v1363_v22 = vpop.f32.mrf.mxu1 }
 0x2b9   : > { %v1404_v55 = vmax.f32 %v2944_v60, 0.0  ;;  %v2313_v22 = vld [vmem:[%s3183_s5] sm:$0xff]  }
 0x2ba   : > { %v1366_v62 = vpop.f32.mrf.mxu1 }
 0x2bb   : > { %v2951_v4 = vadd.f32 %v2895_v20, %v1366_v62  ;;  %1443 = vrot.lane.b32.xlu1 %v1404_v55, %s2338_s14 }
 0x2bc   : > { %v1368_v8 = vpop.f32.mrf.mxu1 }
 0x2bd   : > { %v1405_v18 = vmax.f32 %v2951_v4, 0.0 }
 0x2be   : > { %v1369_v33 = vpop.f32.mrf.mxu1 }
 0x2bf   : > { %v2958_v2 = vadd.f32 %v2895_v20, %v1369_v33  ;;  %1445 = vrot.lane.b32.xlu0 %v1405_v18, %s2338_s14 }
 0x2c0   : > { %v1371_v7 = vpop.f32.mrf.mxu1 }
 0x2c1   : > { %v1406_v37 = vmax.f32 %v2958_v2, 0.0 }
 0x2c2   : > { %v1374_v34 = vpop.f32.mrf.mxu1 }
 0x2c3   : > { %v2965_v39 = vadd.f32 %v2895_v20, %v1374_v34  ;;  %1447 = vrot.lane.b32.xlu1 %v1406_v37, %s2338_s14 }
 0x2c4   : > { %v1376_v41 = vpop.f32.mrf.mxu1 }
 0x2c5   : > { %v1407_v38 = vmax.f32 %v2965_v39, 0.0 }
 0x2c6   : > { %v1377_v44 = vpop.f32.mrf.mxu1 }
 0x2c7   : > { %v2972_v3 = vadd.f32 %v2895_v20, %v1377_v44  ;;  %1449 = vrot.lane.b32.xlu0 %v1407_v38, %s2338_s14 }
 0x2c8   : > { %v1379_v6 = vpop.f32.mrf.mxu1 }
 0x2c9   : > { %v1408_v48 = vmax.f32 %v2972_v3, 0.0 }
 0x2ca   : > { %v1382_v5 = vpop.f32.mrf.mxu1 }
 0x2cb   : > { %v2979_v9 = vadd.f32 %v2895_v20, %v1382_v5  ;;  %1451 = vrot.lane.b32.xlu1 %v1408_v48, %s2338_s14 }
 0x2cc   : > { %v1384_v42 = vpop.f32.mrf.mxu1 }
 0x2cd   : > { %v1409_v11 = vmax.f32 %v2979_v9, 0.0 }
 0x2ce   : > { %v1385_v13 = vpop.f32.mrf.mxu1 }
 0x2cf   : > { %v2986_v47 = vadd.f32 %v2895_v20, %v1385_v13  ;;  %1453 = vrot.lane.b32.xlu0 %v1409_v11, %s2338_s14 }
 0x2d0   : > { %v1387_v19 = vpop.f32.mrf.mxu1 }
 0x2d1   : > { %v1410_v15 = vmax.f32 %v2986_v47, 0.0 }
 0x2d3   : > { %1455 = vrot.lane.b32.xlu1 %v1410_v15, %s2338_s14 }
 0x2d4   : > { %v1390_v10 = vpop.f32.mrf.mxu1 }
 0x2d5   : > { %v2996_v16 = vadd.f32 %v2895_v20, %v1390_v10 }
 0x2d6   : > { %v1392_v21 = vpop.f32.mrf.mxu1 }
 0x2d7   : > { %v1411_v12 = vmax.f32 %v2996_v16, 0.0 }
 0x2d8   : > { %v1393_v45 = vpop.f32.mrf.mxu1 }
 0x2d9   : > { %v3000_v49 = vadd.f32 %v2895_v20, %v1393_v45  ;;  %1457 = vrot.lane.b32.xlu0 %v1411_v12, %s2338_s14  ;;  %v2299_v20 = vld [vmem:[%s3183_s5 + $0x38] sm:$0xff]  }
 0x2da   : > { %v1395_v14 = vpop.f32.mrf.mxu1  ;;  %2127 = vmatpush3.bf16.msra.mxu0 %v2299_v20 }
 0x2db   : > { %v1412_v40 = vmax.f32 %v3000_v49, 0.0  ;;  %2128 = vmatprep.subr.bf16.mxu0 %v2300_v31 }
 0x2dd   : > { %1459 = vrot.lane.b32.xlu1 %v1412_v40, %s2338_s14 }
 0x2de   : > { %2129 = vmatpush3.bf16.msra.mxu0 %v2301_v53 }
 0x2df   : > { %2130 = vmatprep.subr.bf16.mxu0 %v2302_v24 }
 0x2e2   : > { %2131 = vmatpush3.bf16.msra.mxu0 %v2303_v28 }
 0x2e3   : > { %2132 = vmatprep.subr.bf16.mxu0 %v2304_v50 }
 0x2e6   : > { %2133 = vmatpush3.bf16.msra.mxu0 %v2305_v27 }
 0x2e7   : > { %2134 = vmatprep.subr.bf16.mxu0 %v2306_v36 }
 0x2ea   : > { %2135 = vmatpush3.bf16.msra.mxu0 %v2307_v29 }
 0x2eb   : > { %2136 = vmatprep.subr.bf16.mxu0 %v2308_v32 }
 0x2ee   : > { %2137 = vmatpush3.bf16.msra.mxu0 %v2309_v52 }
 0x2ef   : > { %2138 = vmatprep.subr.bf16.mxu0 %v2310_v57  ;;  %v2314_v57 = vld [vmem:[%s3183_s5 + $0xf8] sm:$0xff]  }
 0x2f2   : > { %2139 = vmatpush3.bf16.msra.mxu0 %v2311_v58 }
 0x2f3   : > { %2140 = vmatprep.subr.bf16.mxu0 %v2312_v1 }
 0x2f6   : > { %2141 = vmatpush3.bf16.msra.mxu0 %v2313_v22 }
 0x2f7   : > { %2148 = vmatprep.subr.bf16.mxu0 %v2314_v57 }
 0x30f   : > { %v1430_v62 = vpop.permute.xlu0 %1429 }
 0x310   : > { %v1477_v8 = vmax.f32 %v1397_v25, %v1430_v62 }
 0x312   : > { %1493 = vst.msk [vmem:[#allocation4] sm:$0xff] %vm817_vm3, %v1477_v8 }
 0x313   : > { %v1432_v33 = vpop.permute.xlu1 %1431 }
 0x314   : > { %v1478_v7 = vmax.f32 %v1398_v23, %v1432_v33 }
 0x316   : > { %1494 = vst.msk [vmem:[#allocation4 + $0x8] sm:$0xff] %vm817_vm3, %v1478_v7 }
 0x319   : > { %v1434_v34 = vpop.permute.xlu0 %1433 }
 0x31a   : > { %v1479_v41 = vmax.f32 %v1399_v43, %v1434_v34 }
 0x31c   : > { %1495 = vst.msk [vmem:[#allocation4 + $0x10] sm:$0xff] %vm817_vm3, %v1479_v41 }
 0x31d   : > { %v1509_v44 = vld [vmem:[#allocation4] ss:$2 sm:$0xff]  ;;  %v1525_v6 = vld [vmem:[#allocation4 + $0x1] ss:$2 sm:$0xff]  ;;  %v1436_v5 = vpop.permute.xlu1 %1435 }
 0x31e   : > { %v1540_v42 = vmax.f32 %v1509_v44, %v1525_v6  ;;  %v1480_v51 = vmax.f32 %v1400_v54, %v1436_v5 }
 0x320   : > { %1548 = vst.msk [vmem:[#allocation5] sm:$0xff] %vm817_vm3, %v1540_v42  ;;  %1496 = vst.msk [vmem:[#allocation4 + $0x18] sm:$0xff] %vm817_vm3, %v1480_v51 }
 0x321   : > { %v1438_v25 = vpop.permute.xlu0 %1437 }
 0x322   : > { %v1481_v35 = vmax.f32 %v1401_v30, %v1438_v25 }
 0x324   : > { %1497 = vst.msk [vmem:[#allocation4 + $0x20] sm:$0xff] %vm817_vm3, %v1481_v35 }
 0x325   : > { %v1440_v23 = vpop.permute.xlu1 %1439 }
 0x326   : > { %v1482_v26 = vmax.f32 %v1402_v0, %v1440_v23 }
 0x327   : > { %v1511_v43 = vld [vmem:[#allocation4 + $0x10] ss:$2 sm:$0xff]  ;;  %v1527_v13 = vld [vmem:[#allocation4 + $0x11] ss:$2 sm:$0xff] }
 0x328   : > { %v1541_v19 = vmax.f32 %v1511_v43, %v1527_v13  ;;  %1498 = vst.msk [vmem:[#allocation4 + $0x28] sm:$0xff] %vm817_vm3, %v1482_v26 }
 0x329   : > { %v1442_v56 = vpop.permute.xlu0 %1441 }
 0x32a   : > { %1549 = vst.msk [vmem:[#allocation5 + $0x8] sm:$0xff] %vm817_vm3, %v1541_v19  ;;  %v1483_v54 = vmax.f32 %v1403_v63, %v1442_v56 }
 0x32c   : > { %1499 = vst.msk [vmem:[#allocation4 + $0x30] sm:$0xff] %vm817_vm3, %v1483_v54 }
 0x32d   : > { %v1444_v59 = vpop.permute.xlu1 %1443 }
 0x32e   : > { %v1484_v30 = vmax.f32 %v1404_v55, %v1444_v59 }
 0x32f   : > { %v1513_v10 = vld [vmem:[#allocation4 + $0x20] ss:$2 sm:$0xff]  ;;  %v1529_v46 = vld [vmem:[#allocation4 + $0x21] ss:$2 sm:$0xff] }
 0x330   : > { %v1542_v0 = vmax.f32 %v1513_v10, %v1529_v46  ;;  %1500 = vst.msk [vmem:[#allocation4 + $0x38] sm:$0xff] %vm817_vm3, %v1484_v30 }
 0x331   : > { %v1446_v21 = vpop.permute.xlu0 %1445 }
 0x332   : > { %1550 = vst.msk [vmem:[#allocation5 + $0x10] sm:$0xff] %vm817_vm3, %v1542_v0  ;;  %v1485_v45 = vmax.f32 %v1405_v18, %v1446_v21 }
 0x334   : > { %1501 = vst.msk [vmem:[#allocation4 + $0x40] sm:$0xff] %vm817_vm3, %v1485_v45  ;;  %v2315_v45 = vld [vmem:[%s3183_s5 + $0xb8] sm:$0xff]  }
 0x335   : > { %v1448_v61 = vpop.permute.xlu1 %1447 }
 0x336   : > { %v1486_v63 = vmax.f32 %v1406_v37, %v1448_v61  ;;  %v2316_v61 = vld [vmem:[%s3183_s5 + $0xf0] sm:$0xff]  }
 0x337   : > { %v1515_v14 = vld [vmem:[#allocation4 + $0x30] ss:$2 sm:$0xff]  ;;  %v1531_v60 = vld [vmem:[#allocation4 + $0x31] ss:$2 sm:$0xff] }
 0x338   : > { %v1543_v55 = vmax.f32 %v1515_v14, %v1531_v60  ;;  %1502 = vst.msk [vmem:[#allocation4 + $0x48] sm:$0xff] %vm817_vm3, %v1486_v63  ;;  %v2317_v14 = vld [vmem:[%s3183_s5 + $0xb0] sm:$0xff]   ;;  %v2318_v60 = vld [vmem:[%s3183_s5 + $0xe8] sm:$0xff]  }
 0x339   : > { %v1450_v17 = vpop.permute.xlu0 %1449 }
 0x33a   : > { %1551 = vst.msk [vmem:[#allocation5 + $0x18] sm:$0xff] %vm817_vm3, %v1543_v55  ;;  %v1487_v20 = vmax.f32 %v1407_v38, %v1450_v17  ;;  %v2319_v55 = vld [vmem:[%s3183_s5 + $0xa8] sm:$0xff]   ;;  %v2320_v17 = vld [vmem:[%s3183_s5 + $0xe0] sm:$0xff]  }
 0x33c   : > { %1503 = vst.msk [vmem:[#allocation4 + $0x50] sm:$0xff] %vm817_vm3, %v1487_v20  ;;  %v2321_v20 = vld [vmem:[%s3183_s5 + $0xa0] sm:$0xff]  }
 0x33d   : > { %v1452_v4 = vpop.permute.xlu1 %1451 }
 0x33e   : > { %v1488_v18 = vmax.f32 %v1408_v48, %v1452_v4  ;;  %v2322_v4 = vld [vmem:[%s3183_s5 + $0xd8] sm:$0xff]  }
 0x33f   : > { %v1517_v31 = vld [vmem:[#allocation4 + $0x40] ss:$2 sm:$0xff]  ;;  %v1533_v2 = vld [vmem:[#allocation4 + $0x41] ss:$2 sm:$0xff] }
 0x340   : > { %v1544_v37 = vmax.f32 %v1517_v31, %v1533_v2  ;;  %1504 = vst.msk [vmem:[#allocation4 + $0x58] sm:$0xff] %vm817_vm3, %v1488_v18  ;;  %v2323_v18 = vld [vmem:[%s3183_s5 + $0x98] sm:$0xff]   ;;  %v2324_v31 = vld [vmem:[%s3183_s5 + $0xd0] sm:$0xff]  }
 0x341   : > { %v1454_v53 = vpop.permute.xlu0 %1453  ;;  %v1576_v16 = vld [vmem:[#allocation5 + $0x5] ss:$8 sm:$0xf]  ;;  %v1560_v58 = vld [vmem:[#allocation5 + $0x1] ss:$8 sm:$0xf] }
 0x342   : > { %1552 = vst.msk [vmem:[#allocation5 + $0x20] sm:$0xff] %vm817_vm3, %v1544_v37  ;;  %v1489_v24 = vmax.f32 %v1409_v11, %v1454_v53  ;;  %v1568_v1 = vld [vmem:[#allocation5 + $0x3] ss:$8 sm:$0xf] }
 0x343   : > { %v1556_v25 = vld [vmem:[#allocation5] ss:$8 sm:$0xf]  ;;  %v1564_v43 = vld [vmem:[#allocation5 + $0x2] ss:$8 sm:$0xf] }
 0x344   : > { %1505 = vst.msk [vmem:[#allocation4 + $0x60] sm:$0xff] %vm817_vm3, %v1489_v24  ;;  %v1580_v13 = vld [vmem:[#allocation5 + $0x6] ss:$8 sm:$0xf] }
 0x345   : > { %v1456_v39 = vpop.permute.xlu1 %1455  ;;  %v2325_v2 = vld [vmem:[%s3183_s5 + $0x90] sm:$0xff]   ;;  %v2326_v37 = vld [vmem:[%s3183_s5 + $0xc8] sm:$0xff]  }
 0x346   : > { %v1490_v38 = vmax.f32 %v1410_v15, %v1456_v39  ;;  %v2327_v53 = vld [vmem:[%s3183_s5 + $0x88] sm:$0xff]   ;;  %v2328_v39 = vld [vmem:[%s3183_s5 + $0xc0] sm:$0xff]  }
 0x347   : > { %v1519_v28 = vld [vmem:[#allocation4 + $0x50] ss:$2 sm:$0xff]  ;;  %v1535_v3 = vld [vmem:[#allocation4 + $0x51] ss:$2 sm:$0xff] }
 0x348   : > { %v1545_v48 = vmax.f32 %v1519_v28, %v1535_v3  ;;  %1506 = vst.msk [vmem:[#allocation4 + $0x68] sm:$0xff] %vm817_vm3, %v1490_v38  ;;  %v1572_v28 = vld [vmem:[#allocation5 + $0x4] ss:$8 sm:$0xf] }
 0x34a   : > { %1553 = vst.msk [vmem:[#allocation5 + $0x28] sm:$0xff] %vm817_vm3, %v1545_v48  ;;  %v2329_v48 = vld [vmem:[%s3183_s5 + $0x80] sm:$0xff]  }
 0x34b   : > { %v1458_v50 = vpop.permute.xlu0 %1457 }
 0x34c   : > { %v1491_v27 = vmax.f32 %v1411_v12, %v1458_v50  ;;  %v1584_v12 = vld [vmem:[#allocation5 + $0x7] ss:$8 sm:$0xf] }
 0x34e   : > { %1507 = vst.msk [vmem:[#allocation4 + $0x70] sm:$0xff] %vm817_vm3, %v1491_v27 }
 0x34f   : > { %v1521_v9 = vld [vmem:[#allocation4 + $0x60] ss:$2 sm:$0xff]  ;;  %v1537_v11 = vld [vmem:[#allocation4 + $0x61] ss:$2 sm:$0xff]  ;;  %v1460_v36 = vpop.permute.xlu1 %1459 }
 0x350   : > { %v1546_v29 = vmax.f32 %v1521_v9, %v1537_v11  ;;  %v1492_v47 = vmax.f32 %v1412_v40, %v1460_v36 }
 0x352   : > { %1554 = vst.msk [vmem:[#allocation5 + $0x30] sm:$0xff] %vm817_vm3, %v1546_v29  ;;  %1508 = vst.msk [vmem:[#allocation4 + $0x78] sm:$0xff] %vm817_vm3, %v1492_v47 }
 0x359   : > { %v1523_v15 = vld [vmem:[#allocation4 + $0x70] ss:$2 sm:$0xff]  ;;  %v1539_v32 = vld [vmem:[#allocation4 + $0x71] ss:$2 sm:$0xff] }
 0x35a   : > { %v1547_v52 = vmax.f32 %v1523_v15, %v1539_v32  ;;  %v2073_v15 = vld [vmem:[%s3184_s6] ss:$0 sm:$0xff] }
 0x35c   : > { %1555 = vst.msk [vmem:[#allocation5 + $0x38] sm:$0xff] %vm817_vm3, %v1547_v52 }
 0x363   : > { %v1577_v22 = vld [vmem:[#allocation5 + $0x5] ss:$8 sm:$0xf0]  ;;  %v1585_v49 = vld [vmem:[#allocation5 + $0x7] ss:$8 sm:$0xf0] }
 0x364   : > { %v1578_v40 = vor.u32 %v1577_v22, %v1576_v16  ;;  %v1586_v62 = vor.u32 %v1585_v49, %v1584_v12  ;;  %v1561_v8 = vld [vmem:[#allocation5 + $0x1] ss:$8 sm:$0xf0]  ;;  %v1569_v33 = vld [vmem:[#allocation5 + $0x3] ss:$8 sm:$0xf0] }
 0x365   : > { %v1562_v7 = vor.u32 %v1561_v8, %v1560_v58  ;;  %v1570_v34 = vor.u32 %v1569_v33, %v1568_v1  ;;  %v1557_v6 = vld [vmem:[#allocation5] ss:$8 sm:$0xf0]  ;;  %v1565_v5 = vld [vmem:[#allocation5 + $0x2] ss:$8 sm:$0xf0] }
 0x366   : > { %v2263_v41 = vpack.i.bf16 %v1578_v40, %v1586_v62  ;;  %v1581_v42 = vld [vmem:[#allocation5 + $0x6] ss:$8 sm:$0xf0]  ;;  %v1558_v26 = vor.u32 %v1557_v6, %v1556_v25  ;;  %v1566_v54 = vor.u32 %v1565_v5, %v1564_v43  ;;  %v1573_v24 = vld [vmem:[#allocation5 + $0x4] ss:$8 sm:$0xf0] }
 0x367   : > { %v2258_v44 = vpack.i.bf16 %v1562_v7, %v1570_v34  ;;  %v1582_v59 = vor.u32 %v1581_v42, %v1580_v13  ;;  %v1574_v3 = vor.u32 %v1573_v24, %v1572_v28 }
 0x368   : > { %2264 = vrot.lane.b32.xlu1 %v2263_v41, %s2338_s14 }
 0x369   : > { %2259 = vrot.lane.b32.xlu0 %v2258_v44, %s2338_s14 }
 0x3da   : > { %v2265_v51 = vpop.permute.xlu1 %2264 }
 0x3db   : > { %v2266_v35 = vunpack.i.l.bf16 %v2265_v51  ;;  %v2260_v23 = vpop.permute.xlu0 %2259  ;;  %v2267_v38 = vunpack.i.h.bf16 %v2265_v51 }
 0x3dc   : > { %v2262_v19 = vunpack.i.h.bf16 %v2260_v23  ;;  %v2261_v56 = vunpack.i.l.bf16 %v2260_v23 }
 0x3dd   : > { %v1606_v46 = vsel %vm817_vm3, %v1582_v59, %v2266_v35  ;;  %v1605_v50 = vsel %vm817_vm3, %v1574_v3, %v2267_v38 }
 0x3de   : > { %v1603_v30 = vsel %vm817_vm3, %v1558_v26, %v2262_v19  ;;  %v1604_v10 = vsel %vm817_vm3, %v1566_v54, %v2261_v56  ;;  %v1610_v63 = vpack.c.bf16 %v1606_v46, %v1606_v46  ;;  %v1609_v27 = vpack.c.bf16 %v1605_v50, %v1605_v50 }
 0x3df   : > { %v1607_v0 = vpack.c.bf16 %v1603_v30, %v1603_v30  ;;  %v1608_v21 = vpack.c.bf16 %v1604_v10, %v1604_v10  ;;  %vm1954_vm3 = vcmask 64512  }
 0x3e1   : > { %1906 = vmatprep.mubr.bf16.mxu0 %v1608_v21 }
 0x3e2   : > { %1907 = vmatmul.mubr.bf16.vlgmr.msra.gmra.mxu0 %v1607_v0 }
 0x3e3   : > { %2149 = vmatpush3.bf16.msra.mxu0 %v2315_v45  ;;  %1946 = vmatprep.mubr.bf16.mxu0 %v1610_v63 }
 0x3e4   : > { %2150 = vmatprep.subr.bf16.mxu0 %v2316_v61 }
 0x3e7   : > { %2151 = vmatpush3.bf16.msra.mxu0 %v2317_v14 }
 0x3e8   : > { %2152 = vmatprep.subr.bf16.mxu0 %v2318_v60 }
 0x3eb   : > { %2153 = vmatpush3.bf16.msra.mxu0 %v2319_v55 }
 0x3ec   : > { %2154 = vmatprep.subr.bf16.mxu0 %v2320_v17 }
 0x3ef   : > { %2155 = vmatpush3.bf16.msra.mxu0 %v2321_v20 }
 0x3f0   : > { %2156 = vmatprep.subr.bf16.mxu0 %v2322_v4 }
 0x3f3   : > { %2157 = vmatpush3.bf16.msra.mxu0 %v2323_v18 }
 0x3f4   : > { %2158 = vmatprep.subr.bf16.mxu0 %v2324_v31 }
 0x3f7   : > { %2159 = vmatpush3.bf16.msra.mxu0 %v2325_v2 }
 0x3f8   : > { %2160 = vmatprep.subr.bf16.mxu0 %v2326_v37 }
 0x3fb   : > { %2161 = vmatpush3.bf16.msra.mxu0 %v2327_v53 }
 0x3fc   : > { %2162 = vmatprep.subr.bf16.mxu0 %v2328_v39 }
 0x3ff   : > { %2163 = vmatpush3.bf16.msra.mxu0 %v2329_v48 }
 0x402   : > { %1947 = vmatmul.mubr.bf16.vlgmr.msra.gmra.mxu0 %v1609_v27 }
 0x4a2   : > { %v2142_v9 = vpop.f32.mrf.mxu0 }
 0x4a4   : > { %v2143_v11 = vpop.f32.mrf.mxu0 }
 0x4a5   : > { %v2144_v47 = vadd.f32 %v2143_v11, %v2142_v9 }
 0x4a6   : > { %v2145_v36 = vpop.f32.mrf.mxu0 }
 0x4a7   : > { %v1909_v16 = vadd.f32 %v2144_v47, %v2073_v15 }
 0x4a8   : > { %v2146_v29 = vpop.f32.mrf.mxu0 }
 0x4c2   : > { %v2164_v32 = vpop.f32.mrf.mxu0 }
 0x4c4   : > { %v2165_v52 = vpop.f32.mrf.mxu0 }
 0x4c5   : > { %v2166_v12 = vadd.f32 %v2165_v52, %v2164_v32 }
 0x4c6   : > { %v2167_v57 = vpop.f32.mrf.mxu0 }
 0x4c7   : > { %v1949_v58 = vadd.f32 %v2166_v12, %v1909_v16 }
 0x4c8   : > { %v2168_v1 = vpop.f32.mrf.mxu0 }
 0x4c9   : > { %1955 = vst.msk [vmem:[%s278_s30] sm:$0xff] %vm1954_vm3, %v1949_v58 }
 0x4ca PF: > { %s17_s24 = sadd.s32 1, %s2336_s24  }
 0x4cb   : > { %p14_p5 = scmp.ge.s32.totalorder %s17_s24, 4  }
 0x4cd   :  { %16 = sbr.rel (!%p14_p5) target bundleno = 1 (0x1), region = 131 }

</bundles_post_ra>
